<compile_context>
chip_gen: v7x
topology: tpu7x:2x2x1
jax: 0.10.0
libtpu: 0.0.40
codegen_flags: <defaults>
</compile_context>

<pallas_src>
import jax
import jax.numpy as jnp
from jax.experimental import pallas as pl
from jax.experimental.pallas import tpu as pltpu

# ---------------- configuration (small, consistent with the module) ----------------
EMB_DIM = 128                 # emb_dim
NUM_COLS = 10                 # num_cols
H_SIZE = 32                   # h_size ; equals emb_dim//4 so pooled mc seeds 'h'
HS = EMB_DIM // 4             # x_size of the cell (32)
T_TABLE = 3                   # number of table-feature rows per node

_HP = jax.lax.Precision.HIGHEST


def _round_up(x, m):
    return ((x + m - 1) // m) * m


def _bf16_dot(a, b):
    # single-pass MXU matmul with f32 accumulation (used identically in kernel & ref)
    return jnp.dot(a.astype(jnp.bfloat16), b.astype(jnp.bfloat16),
                   preferred_element_type=jnp.float32)


# ------------------------------ fused forward kernel ------------------------------
def tree_lstm_kernel(oh_col_ref, fcb_ref, emb_ref, wblk_ref, ublk_ref, ball_ref,
                     oh_gl_ref, oh_gr_ref, oh_gn_ref, oh_sc_ref, keep_ref,
                     h_out_ref):
    n_state, H = h_out_ref.shape
    hs = emb_ref.shape[1] // 4          # embedding hidden (= x_size)
    n_key = oh_col_ref.shape[0] // n_state     # 2 + num_table_entries
    l_pad = oh_sc_ref.shape[1]
    n_levels = oh_gl_ref.shape[0] // l_pad

    def bdot(a, b_bf16):                # single-pass bf16 MXU matmul, f32 accumulation
        return jnp.dot(a.astype(jnp.bfloat16), b_bf16,
                       preferred_element_type=jnp.float32)

    def xdot(a, b):                     # exact f32 one-hot select/scatter on the MXU
        return jnp.dot(a, b, precision=_HP, preferred_element_type=jnp.float32)

    # ---- node init: ONE fused one-hot embedding gather + 4-tap contraction ----
    # rows of `g` are [left | right | table_0..T-1] blocks of n_state nodes each
    g = jnp.dot(oh_col_ref[...], emb_ref[...],
                preferred_element_type=jnp.float32)                       # (n_mc, 4*hs)
    prod = g * fcb_ref[...]                                               # fc pre-broadcast
    mc = (prod[:, 0 * hs:1 * hs] + prod[:, 1 * hs:2 * hs]
          + prod[:, 2 * hs:3 * hs] + prod[:, 3 * hs:4 * hs])              # (n_mc, hs)

    mc_l = mc[0:n_state]
    mc_r = mc[n_state:2 * n_state]
    # fused [Wiou_l|Wf_l] / [Wiou_r|Wf_r] as two K=hs dots (no lane concat)
    wx = bdot(mc_l, wblk_ref[0:hs, :]) + bdot(mc_r, wblk_ref[hs:2 * hs, :])  # (n_state, 4H)

    h = mc[2 * n_state:3 * n_state]                   # table max-pool seeds h
    for k in range(3, n_key):
        h = jnp.maximum(h, mc[k * n_state:(k + 1) * n_state])
    c = jnp.zeros((n_state, H), jnp.float32)

    # ---- bottom-up levels: one-hot MXU gather -> cell -> one-hot MXU scatter ----
    ub_l = ublk_ref[0:H, :]                           # hoisted weight-half loads
    ub_r = ublk_ref[H:2 * H, :]
    ball = ball_ref[...]
    for lvl in range(n_levels):                       # static unroll (few levels)
        gl = oh_gl_ref[lvl * l_pad:(lvl + 1) * l_pad, :]          # (l_pad, n_state)
        gr = oh_gr_ref[lvl * l_pad:(lvl + 1) * l_pad, :]
        gn = oh_gn_ref[lvl * l_pad:(lvl + 1) * l_pad, :]
        sc = oh_sc_ref[lvl * n_state:(lvl + 1) * n_state, :]      # (n_state, l_pad)
        keep = keep_ref[lvl * n_state:(lvl + 1) * n_state, :]     # (n_state, H)

        hl = xdot(gl, h)                                          # (l_pad, H)
        hr = xdot(gr, h)
        csum = xdot(gl + gr, c)                                   # c_l + c_r
        wxg = xdot(gn, wx)                                        # (l_pad, 4H)

        # fused [U_iou | U_f] as two K=H dots + fused [b_iou | U_f.bias]
        u_all = bdot(hl, ub_l) + bdot(hr, ub_r) + ball            # (l_pad, 5H)

        iou = wxg[:, 0:3 * H] + u_all[:, 0:3 * H]                 # wioux + U_iou + b_iou
        eq2 = wxg[:, 3 * H:4 * H] + u_all[:, 3 * H:4 * H] + u_all[:, 4 * H:5 * H]
        f_g = jax.nn.sigmoid(eq2)
        c_red = f_g * csum                                        # f * (c_l + c_r)
        i_g = jax.nn.sigmoid(iou[:, 0:H])
        o_g = jax.nn.sigmoid(iou[:, H:2 * H])
        u_g = jnp.tanh(iou[:, 2 * H:3 * H])
        c_new = i_g * u_g + c_red
        h_new = o_g * jnp.tanh(c_new)

        # scatter: padded slots have zero one-hot columns; keep=0 on updated rows
        h = h * keep + xdot(sc, h_new)
        c = c * keep + xdot(sc, c_new)

    h_out_ref[...] = h


# ------------------------------- forward (Pallas) -------------------------------
def tree_lstm_forward_pallas(params, col_left, col_right, table_feat, levels, root_ids):
    bs = col_left.shape[0]
    n_tab = table_feat.shape[1]
    H = H_SIZE
    hs = HS
    n_key = 2 + n_tab
    f32 = jnp.float32

    n_levels = len(levels)
    max_level = max(int(n.shape[0]) for n, _, _ in levels)
    l_pad = max(8, _round_up(max_level, 8))
    n_state = _round_up(bs, 8)
    nc_pad = max(8, _round_up(NUM_COLS, 8))
    n_mc = n_key * n_state

    # ---- per-(node, key) column one-hots + 4-tap weights (key-major row blocks) ----
    cid = jnp.concatenate([col_left[:, 0:1], col_right[:, 0:1],
                           table_feat[..., 0]], axis=1).astype(jnp.int32)      # (bs, n_key)
    fc4 = jnp.concatenate([col_left[:, None, 1:5], col_right[:, None, 1:5],
                           table_feat[..., 1:5]], axis=1)                      # (bs, n_key, 4)
    cid = jnp.zeros((n_state, n_key), jnp.int32).at[:bs].set(cid)
    fc4 = jnp.zeros((n_state, n_key, 4), f32).at[:bs].set(fc4)
    cid_km = cid.T.reshape(n_mc)                                   # key-major flat ids
    fcs_km = jnp.transpose(fc4, (1, 0, 2)).reshape(n_mc, 4)
    oh_col = (cid_km[:, None] == jnp.arange(nc_pad, dtype=jnp.int32)[None, :]
              ).astype(jnp.bfloat16)                               # (n_mc, nc_pad)
    fcb = jnp.repeat(fcs_km, hs, axis=1)                           # (n_mc, 4*hs) pre-broadcast

    # ---- one-time weight layout prep ----
    emb = params['embedding']
    # emb_stack[c, d*hs + h] = emb[c, h*4 + d]  (tap-major, hidden lane-contiguous)
    emb_stack = emb.reshape(NUM_COLS, hs, 4).transpose(0, 2, 1).reshape(NUM_COLS, 4 * hs)
    emb_stack = jnp.zeros((nc_pad, 4 * hs), f32).at[:NUM_COLS].set(emb_stack
                                                                   ).astype(jnp.bfloat16)
    w_block = jnp.concatenate(
        [jnp.concatenate([params['Wiou_l'], params['Wf_l']], axis=1),
         jnp.concatenate([params['Wiou_r'], params['Wf_r']], axis=1)],
        axis=0).astype(jnp.bfloat16)                               # (2*hs, 4H) = (64, 128)
    u_block = jnp.concatenate([params['Uiou'], params['Uf_w']],
                              axis=1).astype(jnp.bfloat16)         # (2H, 5H) = (64, 160)
    b_all = jnp.tile(jnp.concatenate([params['b_iou'], params['Uf_b']], axis=1),
                     (l_pad, 1))                                   # (l_pad, 5H)

    # ---- level schedule -> one-hot gather / scatter / keep tables (host precompute) ----
    state_iota = jnp.arange(n_state, dtype=jnp.int32)[None, :]

    def slot_onehot(idx):
        ln = int(idx.shape[0])
        oh = (idx.astype(jnp.int32)[:, None] == state_iota).astype(f32)   # (ln, n_state)
        return jnp.zeros((l_pad, n_state), f32).at[:ln].set(oh)           # padded slots = 0

    gl_t, gr_t, gn_t, sc_t, keep_t = [], [], [], [], []
    for nodes, lk, rk in levels:
        g_n = slot_onehot(nodes)
        gl_t.append(slot_onehot(lk))
        gr_t.append(slot_onehot(rk))
        gn_t.append(g_n)
        sc_t.append(g_n.T)                                                 # (n_state, l_pad)
        keep_t.append(jnp.broadcast_to(1.0 - jnp.max(g_n, axis=0)[:, None], (n_state, H)))
    oh_gl = jnp.concatenate(gl_t, axis=0)      # (n_levels*l_pad, n_state)
    oh_gr = jnp.concatenate(gr_t, axis=0)
    oh_gn = jnp.concatenate(gn_t, axis=0)
    oh_sc = jnp.concatenate(sc_t, axis=0)      # (n_levels*n_state, l_pad)
    keep = jnp.concatenate(keep_t, axis=0)     # (n_levels*n_state, H)

    inputs = (oh_col, fcb, emb_stack, w_block, u_block, b_all,
              oh_gl, oh_gr, oh_gn, oh_sc, keep)

    def vspec(shape):
        return pl.BlockSpec(shape, lambda i: (0, 0))               # full VMEM-resident block

    h = pl.pallas_call(
        tree_lstm_kernel,
        out_shape=jax.ShapeDtypeStruct((n_state, H), f32),
        grid=(1,),                                                  # single fused invocation
        in_specs=[vspec(x.shape) for x in inputs],
        out_specs=vspec((n_state, H)),
        compiler_params=pltpu.CompilerParams(
            dimension_semantics=("arbitrary",)),
    )(*inputs)

    return h[root_ids]


# ---------------------------- pure-JAX reference ----------------------------
# Matmuls use the same single-pass bf16 MXU precision as the kernel; the embedding
# table is rounded to bf16 to mirror the kernel's single-pass bf16 one-hot gather
# (the contraction itself stays exact f32).
def tree_lstm_forward_ref(params, col_left, col_right, table_feat, levels, root_ids):
    emb = params['embedding'].astype(jnp.bfloat16).astype(jnp.float32)
    H = H_SIZE

    def mc_from(colfeat):
        col_id = colfeat[..., 0].astype(jnp.int32)
        fc = colfeat[..., 1:5]
        cols = emb[col_id].reshape(col_id.shape + (HS, 4))
        return jnp.einsum('...hd,...d->...h', cols, fc, precision=_HP)

    mc_l = mc_from(col_left)
    mc_r = mc_from(col_right)
    wioux = _bf16_dot(mc_l, params['Wiou_l']) + _bf16_dot(mc_r, params['Wiou_r'])
    wfx = _bf16_dot(mc_l, params['Wf_l']) + _bf16_dot(mc_r, params['Wf_r'])

    mcs = mc_from(table_feat)                       # (bs, T, HS)
    h = jnp.max(mcs, axis=1)
    c = jnp.zeros((col_left.shape[0], H), jnp.float32)

    for nodes, lk, rk in levels:
        hcat = jnp.concatenate([h[lk], h[rk]], axis=-1)
        uf = _bf16_dot(hcat, params['Uf_w']) + params['Uf_b']
        eq2 = wfx[nodes] + uf[:, :H] + uf[:, H:]
        f = jax.nn.sigmoid(eq2)
        c_red = f * (c[lk] + c[rk])
        iou = wioux[nodes] + _bf16_dot(hcat, params['Uiou']) + params['b_iou']
        i_g = jax.nn.sigmoid(iou[:, :H])
        o_g = jax.nn.sigmoid(iou[:, H:2 * H])
        u_g = jnp.tanh(iou[:, 2 * H:])
        c_new = i_g * u_g + c_red
        h_new = o_g * jnp.tanh(c_new)
        h = h.at[nodes].set(h_new)
        c = c.at[nodes].set(c_new)
    return h[root_ids]


# ------------------------------- setup helpers -------------------------------
def init_params(key):
    ks = jax.random.split(key, 8)
    w = lambda k, shape, s: jax.random.normal(k, shape, jnp.float32) * s
    return {
        'embedding': w(ks[0], (NUM_COLS, EMB_DIM), 0.1),
        'Wiou_l':    w(ks[1], (HS, 3 * H_SIZE), 0.2),
        'Wiou_r':    w(ks[2], (HS, 3 * H_SIZE), 0.2),
        'Wf_l':      w(ks[3], (HS, H_SIZE), 0.2),
        'Wf_r':      w(ks[4], (HS, H_SIZE), 0.2),
        'Uiou':      w(ks[5], (2 * H_SIZE, 3 * H_SIZE), 0.2),
        'Uf_w':      w(ks[6], (2 * H_SIZE, 2 * H_SIZE), 0.2),
        'Uf_b':      w(ks[7], (1, 2 * H_SIZE), 0.1),
        'b_iou':     jnp.zeros((1, 3 * H_SIZE), jnp.float32),   # nn.Parameter(zeros)
    }


def make_tree():
    """Complete binary tree with 15 nodes: leaves 0-7, internal 8-14, root 14."""
    levels = [
        (jnp.array([8, 9, 10, 11]), jnp.array([0, 2, 4, 6]), jnp.array([1, 3, 5, 7])),
        (jnp.array([12, 13]), jnp.array([8, 10]), jnp.array([9, 11])),
        (jnp.array([14]), jnp.array([12]), jnp.array([13])),
    ]
    root_ids = jnp.array([14])
    return 15, levels, root_ids


def make_inputs(key, bs):
    k1, k2, k3, k4, k5, k6 = jax.random.split(key, 6)
    col_left = jnp.concatenate(
        [jax.random.randint(k1, (bs, 1), 0, NUM_COLS).astype(jnp.float32),
         jax.random.normal(k2, (bs, 4), jnp.float32)], axis=-1)
    col_right = jnp.concatenate(
        [jax.random.randint(k3, (bs, 1), 0, NUM_COLS).astype(jnp.float32),
         jax.random.normal(k4, (bs, 4), jnp.float32)], axis=-1)
    table_feat = jnp.concatenate(
        [jax.random.randint(k5, (bs, T_TABLE, 1), 0, NUM_COLS).astype(jnp.float32),
         jax.random.normal(k6, (bs, T_TABLE, 4), jnp.float32)], axis=-1)
    return col_left, col_right, table_feat


if __name__ == "__main__":
    key = jax.random.PRNGKey(0)
    kp, kx = jax.random.split(key)
    params = init_params(kp)
    bs, levels, root_ids = make_tree()
    col_left, col_right, table_feat = make_inputs(kx, bs)

    fwd = jax.jit(tree_lstm_forward_pallas)
    out = jax.block_until_ready(
        fwd(params, col_left, col_right, table_feat, levels, root_ids))

    ref = jax.block_until_ready(
        tree_lstm_forward_ref(params, col_left, col_right, table_feat, levels, root_ids))

    assert out.shape == (1, H_SIZE)
    # both sides run the W/U matmuls at single-pass bf16 MXU precision; tolerance
    # covers accumulation-order and transcendental-implementation differences.
    assert jnp.allclose(out, ref, atol=5e-3, rtol=5e-3), (out, ref)
    print("KERNEL_OK")
</pallas_src>

<mosaic_0001>
module attributes {stable_mosaic.version = 11 : i64} {
  func.func @tree_lstm_kernel(%arg0: i32, %arg1: memref<80x16xbf16, #tpu.memory_space<vmem>>, %arg2: memref<80x128xf32, #tpu.memory_space<vmem>>, %arg3: memref<16x128xbf16, #tpu.memory_space<vmem>>, %arg4: memref<64x128xbf16, #tpu.memory_space<vmem>>, %arg5: memref<64x160xbf16, #tpu.memory_space<vmem>>, %arg6: memref<8x160xf32, #tpu.memory_space<vmem>>, %arg7: memref<24x16xf32, #tpu.memory_space<vmem>>, %arg8: memref<24x16xf32, #tpu.memory_space<vmem>>, %arg9: memref<24x16xf32, #tpu.memory_space<vmem>>, %arg10: memref<48x8xf32, #tpu.memory_space<vmem>>, %arg11: memref<48x32xf32, #tpu.memory_space<vmem>>, %arg12: memref<16x32xf32, #tpu.memory_space<vmem>>) attributes {dimension_semantics = [#tpu.dimension_semantics<arbitrary>], iteration_bounds = array<i64: 1>, scalar_prefetch = 0 : i64, scratch_operands = 0 : i64, tpu.core_type = #tpu.core_type<tc>, window_params = [{pipeline_mode = #tpu.pipeline_mode<synchronous>, transform_indices = @transform_0, window_bounds = array<i64: 80, 16>}, {pipeline_mode = #tpu.pipeline_mode<synchronous>, transform_indices = @transform_1, window_bounds = array<i64: 80, 128>}, {pipeline_mode = #tpu.pipeline_mode<synchronous>, transform_indices = @transform_2, window_bounds = array<i64: 16, 128>}, {pipeline_mode = #tpu.pipeline_mode<synchronous>, transform_indices = @transform_3, window_bounds = array<i64: 64, 128>}, {pipeline_mode = #tpu.pipeline_mode<synchronous>, transform_indices = @transform_4, window_bounds = array<i64: 64, 160>}, {pipeline_mode = #tpu.pipeline_mode<synchronous>, transform_indices = @transform_5, window_bounds = array<i64: 8, 160>}, {pipeline_mode = #tpu.pipeline_mode<synchronous>, transform_indices = @transform_6, window_bounds = array<i64: 24, 16>}, {pipeline_mode = #tpu.pipeline_mode<synchronous>, transform_indices = @transform_7, window_bounds = array<i64: 24, 16>}, {pipeline_mode = #tpu.pipeline_mode<synchronous>, transform_indices = @transform_8, window_bounds = array<i64: 24, 16>}, {pipeline_mode = #tpu.pipeline_mode<synchronous>, transform_indices = @transform_9, window_bounds = array<i64: 48, 8>}, {pipeline_mode = #tpu.pipeline_mode<synchronous>, transform_indices = @transform_10, window_bounds = array<i64: 48, 32>}, {pipeline_mode = #tpu.pipeline_mode<synchronous>, transform_indices = @transform_11, window_bounds = array<i64: 16, 32>}]} {
    %c0 = arith.constant 0 : index
    %c0_0 = arith.constant 0 : index
    %0 = vector.load %arg1[%c0, %c0_0] : memref<80x16xbf16, #tpu.memory_space<vmem>>, vector<80x16xbf16>
    %c0_1 = arith.constant 0 : index
    %c0_2 = arith.constant 0 : index
    %1 = vector.load %arg3[%c0_1, %c0_2] : memref<16x128xbf16, #tpu.memory_space<vmem>>, vector<16x128xbf16>
    %cst = arith.constant dense<0.000000e+00> : vector<80x128xf32>
    %2 = tpu.matmul %0, %1, %cst {dimension_numbers = #tpu.dot_dimension_numbers<[1], [0], [0], [1], [0, 0, 1, 1], [], []>} : vector<80x16xbf16>, vector<16x128xbf16>, vector<80x128xf32> -> vector<80x128xf32>
    %c0_3 = arith.constant 0 : index
    %c0_4 = arith.constant 0 : index
    %3 = vector.load %arg2[%c0_3, %c0_4] : memref<80x128xf32, #tpu.memory_space<vmem>>, vector<80x128xf32>
    %4 = arith.mulf %2, %3 : vector<80x128xf32>
    %5 = vector.extract_strided_slice %4 {offsets = [0, 0], sizes = [80, 32], strides = [1, 1]} : vector<80x128xf32> to vector<80x32xf32>
    %6 = vector.extract_strided_slice %4 {offsets = [0, 32], sizes = [80, 32], strides = [1, 1]} : vector<80x128xf32> to vector<80x32xf32>
    %7 = arith.addf %5, %6 : vector<80x32xf32>
    %8 = vector.extract_strided_slice %4 {offsets = [0, 64], sizes = [80, 32], strides = [1, 1]} : vector<80x128xf32> to vector<80x32xf32>
    %9 = arith.addf %7, %8 : vector<80x32xf32>
    %10 = vector.extract_strided_slice %4 {offsets = [0, 96], sizes = [80, 32], strides = [1, 1]} : vector<80x128xf32> to vector<80x32xf32>
    %11 = arith.addf %9, %10 : vector<80x32xf32>
    %12 = vector.extract_strided_slice %11 {offsets = [0, 0], sizes = [16, 32], strides = [1, 1]} : vector<80x32xf32> to vector<16x32xf32>
    %13 = vector.extract_strided_slice %11 {offsets = [16, 0], sizes = [16, 32], strides = [1, 1]} : vector<80x32xf32> to vector<16x32xf32>
    %c0_5 = arith.constant 0 : index
    %c0_6 = arith.constant 0 : index
    %14 = vector.load %arg4[%c0_5, %c0_6] : memref<64x128xbf16, #tpu.memory_space<vmem>>, vector<32x128xbf16>
    %15 = arith.truncf %12 : vector<16x32xf32> to vector<16x32xbf16>
    %cst_7 = arith.constant dense<0.000000e+00> : vector<16x128xf32>
    %16 = tpu.matmul %15, %14, %cst_7 {dimension_numbers = #tpu.dot_dimension_numbers<[1], [0], [0], [1], [0, 0, 1, 1], [], []>} : vector<16x32xbf16>, vector<32x128xbf16>, vector<16x128xf32> -> vector<16x128xf32>
    %c32 = arith.constant 32 : index
    %c0_8 = arith.constant 0 : index
    %17 = vector.load %arg4[%c32, %c0_8] : memref<64x128xbf16, #tpu.memory_space<vmem>>, vector<32x128xbf16>
    %18 = arith.truncf %13 : vector<16x32xf32> to vector<16x32xbf16>
    %cst_9 = arith.constant dense<0.000000e+00> : vector<16x128xf32>
    %19 = tpu.matmul %18, %17, %cst_9 {dimension_numbers = #tpu.dot_dimension_numbers<[1], [0], [0], [1], [0, 0, 1, 1], [], []>} : vector<16x32xbf16>, vector<32x128xbf16>, vector<16x128xf32> -> vector<16x128xf32>
    %20 = arith.addf %16, %19 : vector<16x128xf32>
    %21 = vector.extract_strided_slice %11 {offsets = [32, 0], sizes = [16, 32], strides = [1, 1]} : vector<80x32xf32> to vector<16x32xf32>
    %22 = vector.extract_strided_slice %11 {offsets = [48, 0], sizes = [16, 32], strides = [1, 1]} : vector<80x32xf32> to vector<16x32xf32>
    %23 = arith.maximumf %21, %22 : vector<16x32xf32>
    %24 = vector.extract_strided_slice %11 {offsets = [64, 0], sizes = [16, 32], strides = [1, 1]} : vector<80x32xf32> to vector<16x32xf32>
    %25 = arith.maximumf %23, %24 : vector<16x32xf32>
    %cst_10 = arith.constant 0.000000e+00 : f32
    %26 = vector.broadcast %cst_10 : f32 to vector<16x32xf32>
    %c0_11 = arith.constant 0 : index
    %c0_12 = arith.constant 0 : index
    %27 = vector.load %arg5[%c0_11, %c0_12] : memref<64x160xbf16, #tpu.memory_space<vmem>>, vector<32x160xbf16>
    %c32_13 = arith.constant 32 : index
    %c0_14 = arith.constant 0 : index
    %28 = vector.load %arg5[%c32_13, %c0_14] : memref<64x160xbf16, #tpu.memory_space<vmem>>, vector<32x160xbf16>
    %c0_15 = arith.constant 0 : index
    %c0_16 = arith.constant 0 : index
    %29 = vector.load %arg6[%c0_15, %c0_16] : memref<8x160xf32, #tpu.memory_space<vmem>>, vector<8x160xf32>
    %c0_17 = arith.constant 0 : index
    %c0_18 = arith.constant 0 : index
    %30 = vector.load %arg7[%c0_17, %c0_18] : memref<24x16xf32, #tpu.memory_space<vmem>>, vector<8x16xf32>
    %c0_19 = arith.constant 0 : index
    %c0_20 = arith.constant 0 : index
    %31 = vector.load %arg8[%c0_19, %c0_20] : memref<24x16xf32, #tpu.memory_space<vmem>>, vector<8x16xf32>
    %c0_21 = arith.constant 0 : index
    %c0_22 = arith.constant 0 : index
    %32 = vector.load %arg9[%c0_21, %c0_22] : memref<24x16xf32, #tpu.memory_space<vmem>>, vector<8x16xf32>
    %c0_23 = arith.constant 0 : index
    %c0_24 = arith.constant 0 : index
    %33 = vector.load %arg10[%c0_23, %c0_24] : memref<48x8xf32, #tpu.memory_space<vmem>>, vector<16x8xf32>
    %c0_25 = arith.constant 0 : index
    %c0_26 = arith.constant 0 : index
    %34 = vector.load %arg11[%c0_25, %c0_26] : memref<48x32xf32, #tpu.memory_space<vmem>>, vector<16x32xf32>
    %cst_27 = arith.constant dense<0.000000e+00> : vector<8x32xf32>
    %35 = tpu.matmul %30, %25, %cst_27 {dimension_numbers = #tpu.dot_dimension_numbers<[1], [0], [0], [1], [0, 0, 1, 1], [], []>, precision = #tpu.contract_precision<fp32>} : vector<8x16xf32>, vector<16x32xf32>, vector<8x32xf32> -> vector<8x32xf32>
    %cst_28 = arith.constant dense<0.000000e+00> : vector<8x32xf32>
    %36 = tpu.matmul %31, %25, %cst_28 {dimension_numbers = #tpu.dot_dimension_numbers<[1], [0], [0], [1], [0, 0, 1, 1], [], []>, precision = #tpu.contract_precision<fp32>} : vector<8x16xf32>, vector<16x32xf32>, vector<8x32xf32> -> vector<8x32xf32>
    %37 = arith.addf %30, %31 : vector<8x16xf32>
    %cst_29 = arith.constant dense<0.000000e+00> : vector<8x32xf32>
    %38 = tpu.matmul %37, %26, %cst_29 {dimension_numbers = #tpu.dot_dimension_numbers<[1], [0], [0], [1], [0, 0, 1, 1], [], []>, precision = #tpu.contract_precision<fp32>} : vector<8x16xf32>, vector<16x32xf32>, vector<8x32xf32> -> vector<8x32xf32>
    %cst_30 = arith.constant dense<0.000000e+00> : vector<8x128xf32>
    %39 = tpu.matmul %32, %20, %cst_30 {dimension_numbers = #tpu.dot_dimension_numbers<[1], [0], [0], [1], [0, 0, 1, 1], [], []>, precision = #tpu.contract_precision<fp32>} : vector<8x16xf32>, vector<16x128xf32>, vector<8x128xf32> -> vector<8x128xf32>
    %40 = arith.truncf %35 : vector<8x32xf32> to vector<8x32xbf16>
    %cst_31 = arith.constant dense<0.000000e+00> : vector<8x160xf32>
    %41 = tpu.matmul %40, %27, %cst_31 {dimension_numbers = #tpu.dot_dimension_numbers<[1], [0], [0], [1], [0, 0, 1, 1], [], []>} : vector<8x32xbf16>, vector<32x160xbf16>, vector<8x160xf32> -> vector<8x160xf32>
    %42 = arith.truncf %36 : vector<8x32xf32> to vector<8x32xbf16>
    %cst_32 = arith.constant dense<0.000000e+00> : vector<8x160xf32>
    %43 = tpu.matmul %42, %28, %cst_32 {dimension_numbers = #tpu.dot_dimension_numbers<[1], [0], [0], [1], [0, 0, 1, 1], [], []>} : vector<8x32xbf16>, vector<32x160xbf16>, vector<8x160xf32> -> vector<8x160xf32>
    %44 = arith.addf %41, %43 : vector<8x160xf32>
    %45 = arith.addf %44, %29 : vector<8x160xf32>
    %46 = vector.extract_strided_slice %39 {offsets = [0, 0], sizes = [8, 96], strides = [1, 1]} : vector<8x128xf32> to vector<8x96xf32>
    %47 = vector.extract_strided_slice %45 {offsets = [0, 0], sizes = [8, 96], strides = [1, 1]} : vector<8x160xf32> to vector<8x96xf32>
    %48 = arith.addf %46, %47 : vector<8x96xf32>
    %49 = vector.extract_strided_slice %39 {offsets = [0, 96], sizes = [8, 32], strides = [1, 1]} : vector<8x128xf32> to vector<8x32xf32>
    %50 = vector.extract_strided_slice %45 {offsets = [0, 96], sizes = [8, 32], strides = [1, 1]} : vector<8x160xf32> to vector<8x32xf32>
    %51 = arith.addf %49, %50 : vector<8x32xf32>
    %52 = vector.extract_strided_slice %45 {offsets = [0, 128], sizes = [8, 32], strides = [1, 1]} : vector<8x160xf32> to vector<8x32xf32>
    %53 = arith.addf %51, %52 : vector<8x32xf32>
    %54 = arith.negf %53 : vector<8x32xf32>
    %55 = math.exp %54 : vector<8x32xf32>
    %cst_33 = arith.constant 1.000000e+00 : f32
    %56 = vector.broadcast %cst_33 : f32 to vector<8x32xf32>
    %57 = arith.addf %56, %55 : vector<8x32xf32>
    %58 = arith.divf %56, %57 : vector<8x32xf32>
    %59 = arith.mulf %58, %38 : vector<8x32xf32>
    %60 = vector.extract_strided_slice %48 {offsets = [0, 0], sizes = [8, 32], strides = [1, 1]} : vector<8x96xf32> to vector<8x32xf32>
    %61 = arith.negf %60 : vector<8x32xf32>
    %62 = math.exp %61 : vector<8x32xf32>
    %cst_34 = arith.constant 1.000000e+00 : f32
    %63 = vector.broadcast %cst_34 : f32 to vector<8x32xf32>
    %64 = arith.addf %63, %62 : vector<8x32xf32>
    %65 = arith.divf %63, %64 : vector<8x32xf32>
    %66 = vector.extract_strided_slice %48 {offsets = [0, 32], sizes = [8, 32], strides = [1, 1]} : vector<8x96xf32> to vector<8x32xf32>
    %67 = arith.negf %66 : vector<8x32xf32>
    %68 = math.exp %67 : vector<8x32xf32>
    %cst_35 = arith.constant 1.000000e+00 : f32
    %69 = vector.broadcast %cst_35 : f32 to vector<8x32xf32>
    %70 = arith.addf %69, %68 : vector<8x32xf32>
    %71 = arith.divf %69, %70 : vector<8x32xf32>
    %72 = vector.extract_strided_slice %48 {offsets = [0, 64], sizes = [8, 32], strides = [1, 1]} : vector<8x96xf32> to vector<8x32xf32>
    %73 = math.tanh %72 : vector<8x32xf32>
    %74 = arith.mulf %65, %73 : vector<8x32xf32>
    %75 = arith.addf %74, %59 : vector<8x32xf32>
    %76 = math.tanh %75 : vector<8x32xf32>
    %77 = arith.mulf %71, %76 : vector<8x32xf32>
    %78 = arith.mulf %25, %34 : vector<16x32xf32>
    %cst_36 = arith.constant dense<0.000000e+00> : vector<16x32xf32>
    %79 = tpu.matmul %33, %77, %cst_36 {dimension_numbers = #tpu.dot_dimension_numbers<[1], [0], [0], [1], [0, 0, 1, 1], [], []>, precision = #tpu.contract_precision<fp32>} : vector<16x8xf32>, vector<8x32xf32>, vector<16x32xf32> -> vector<16x32xf32>
    %80 = arith.addf %78, %79 : vector<16x32xf32>
    %81 = arith.mulf %26, %34 : vector<16x32xf32>
    %cst_37 = arith.constant dense<0.000000e+00> : vector<16x32xf32>
    %82 = tpu.matmul %33, %75, %cst_37 {dimension_numbers = #tpu.dot_dimension_numbers<[1], [0], [0], [1], [0, 0, 1, 1], [], []>, precision = #tpu.contract_precision<fp32>} : vector<16x8xf32>, vector<8x32xf32>, vector<16x32xf32> -> vector<16x32xf32>
    %83 = arith.addf %81, %82 : vector<16x32xf32>
    %c8 = arith.constant 8 : index
    %c0_38 = arith.constant 0 : index
    %84 = vector.load %arg7[%c8, %c0_38] : memref<24x16xf32, #tpu.memory_space<vmem>>, vector<8x16xf32>
    %c8_39 = arith.constant 8 : index
    %c0_40 = arith.constant 0 : index
    %85 = vector.load %arg8[%c8_39, %c0_40] : memref<24x16xf32, #tpu.memory_space<vmem>>, vector<8x16xf32>
    %c8_41 = arith.constant 8 : index
    %c0_42 = arith.constant 0 : index
    %86 = vector.load %arg9[%c8_41, %c0_42] : memref<24x16xf32, #tpu.memory_space<vmem>>, vector<8x16xf32>
    %c16 = arith.constant 16 : index
    %c0_43 = arith.constant 0 : index
    %87 = vector.load %arg10[%c16, %c0_43] : memref<48x8xf32, #tpu.memory_space<vmem>>, vector<16x8xf32>
    %c16_44 = arith.constant 16 : index
    %c0_45 = arith.constant 0 : index
    %88 = vector.load %arg11[%c16_44, %c0_45] : memref<48x32xf32, #tpu.memory_space<vmem>>, vector<16x32xf32>
    %cst_46 = arith.constant dense<0.000000e+00> : vector<8x32xf32>
    %89 = tpu.matmul %84, %80, %cst_46 {dimension_numbers = #tpu.dot_dimension_numbers<[1], [0], [0], [1], [0, 0, 1, 1], [], []>, precision = #tpu.contract_precision<fp32>} : vector<8x16xf32>, vector<16x32xf32>, vector<8x32xf32> -> vector<8x32xf32>
    %cst_47 = arith.constant dense<0.000000e+00> : vector<8x32xf32>
    %90 = tpu.matmul %85, %80, %cst_47 {dimension_numbers = #tpu.dot_dimension_numbers<[1], [0], [0], [1], [0, 0, 1, 1], [], []>, precision = #tpu.contract_precision<fp32>} : vector<8x16xf32>, vector<16x32xf32>, vector<8x32xf32> -> vector<8x32xf32>
    %91 = arith.addf %84, %85 : vector<8x16xf32>
    %cst_48 = arith.constant dense<0.000000e+00> : vector<8x32xf32>
    %92 = tpu.matmul %91, %83, %cst_48 {dimension_numbers = #tpu.dot_dimension_numbers<[1], [0], [0], [1], [0, 0, 1, 1], [], []>, precision = #tpu.contract_precision<fp32>} : vector<8x16xf32>, vector<16x32xf32>, vector<8x32xf32> -> vector<8x32xf32>
    %cst_49 = arith.constant dense<0.000000e+00> : vector<8x128xf32>
    %93 = tpu.matmul %86, %20, %cst_49 {dimension_numbers = #tpu.dot_dimension_numbers<[1], [0], [0], [1], [0, 0, 1, 1], [], []>, precision = #tpu.contract_precision<fp32>} : vector<8x16xf32>, vector<16x128xf32>, vector<8x128xf32> -> vector<8x128xf32>
    %94 = arith.truncf %89 : vector<8x32xf32> to vector<8x32xbf16>
    %cst_50 = arith.constant dense<0.000000e+00> : vector<8x160xf32>
    %95 = tpu.matmul %94, %27, %cst_50 {dimension_numbers = #tpu.dot_dimension_numbers<[1], [0], [0], [1], [0, 0, 1, 1], [], []>} : vector<8x32xbf16>, vector<32x160xbf16>, vector<8x160xf32> -> vector<8x160xf32>
    %96 = arith.truncf %90 : vector<8x32xf32> to vector<8x32xbf16>
    %cst_51 = arith.constant dense<0.000000e+00> : vector<8x160xf32>
    %97 = tpu.matmul %96, %28, %cst_51 {dimension_numbers = #tpu.dot_dimension_numbers<[1], [0], [0], [1], [0, 0, 1, 1], [], []>} : vector<8x32xbf16>, vector<32x160xbf16>, vector<8x160xf32> -> vector<8x160xf32>
    %98 = arith.addf %95, %97 : vector<8x160xf32>
    %99 = arith.addf %98, %29 : vector<8x160xf32>
    %100 = vector.extract_strided_slice %93 {offsets = [0, 0], sizes = [8, 96], strides = [1, 1]} : vector<8x128xf32> to vector<8x96xf32>
    %101 = vector.extract_strided_slice %99 {offsets = [0, 0], sizes = [8, 96], strides = [1, 1]} : vector<8x160xf32> to vector<8x96xf32>
    %102 = arith.addf %100, %101 : vector<8x96xf32>
    %103 = vector.extract_strided_slice %93 {offsets = [0, 96], sizes = [8, 32], strides = [1, 1]} : vector<8x128xf32> to vector<8x32xf32>
    %104 = vector.extract_strided_slice %99 {offsets = [0, 96], sizes = [8, 32], strides = [1, 1]} : vector<8x160xf32> to vector<8x32xf32>
    %105 = arith.addf %103, %104 : vector<8x32xf32>
    %106 = vector.extract_strided_slice %99 {offsets = [0, 128], sizes = [8, 32], strides = [1, 1]} : vector<8x160xf32> to vector<8x32xf32>
    %107 = arith.addf %105, %106 : vector<8x32xf32>
    %108 = arith.negf %107 : vector<8x32xf32>
    %109 = math.exp %108 : vector<8x32xf32>
    %cst_52 = arith.constant 1.000000e+00 : f32
    %110 = vector.broadcast %cst_52 : f32 to vector<8x32xf32>
    %111 = arith.addf %110, %109 : vector<8x32xf32>
    %112 = arith.divf %110, %111 : vector<8x32xf32>
    %113 = arith.mulf %112, %92 : vector<8x32xf32>
    %114 = vector.extract_strided_slice %102 {offsets = [0, 0], sizes = [8, 32], strides = [1, 1]} : vector<8x96xf32> to vector<8x32xf32>
    %115 = arith.negf %114 : vector<8x32xf32>
    %116 = math.exp %115 : vector<8x32xf32>
    %cst_53 = arith.constant 1.000000e+00 : f32
    %117 = vector.broadcast %cst_53 : f32 to vector<8x32xf32>
    %118 = arith.addf %117, %116 : vector<8x32xf32>
    %119 = arith.divf %117, %118 : vector<8x32xf32>
    %120 = vector.extract_strided_slice %102 {offsets = [0, 32], sizes = [8, 32], strides = [1, 1]} : vector<8x96xf32> to vector<8x32xf32>
    %121 = arith.negf %120 : vector<8x32xf32>
    %122 = math.exp %121 : vector<8x32xf32>
    %cst_54 = arith.constant 1.000000e+00 : f32
    %123 = vector.broadcast %cst_54 : f32 to vector<8x32xf32>
    %124 = arith.addf %123, %122 : vector<8x32xf32>
    %125 = arith.divf %123, %124 : vector<8x32xf32>
    %126 = vector.extract_strided_slice %102 {offsets = [0, 64], sizes = [8, 32], strides = [1, 1]} : vector<8x96xf32> to vector<8x32xf32>
    %127 = math.tanh %126 : vector<8x32xf32>
    %128 = arith.mulf %119, %127 : vector<8x32xf32>
    %129 = arith.addf %128, %113 : vector<8x32xf32>
    %130 = math.tanh %129 : vector<8x32xf32>
    %131 = arith.mulf %125, %130 : vector<8x32xf32>
    %132 = arith.mulf %80, %88 : vector<16x32xf32>
    %cst_55 = arith.constant dense<0.000000e+00> : vector<16x32xf32>
    %133 = tpu.matmul %87, %131, %cst_55 {dimension_numbers = #tpu.dot_dimension_numbers<[1], [0], [0], [1], [0, 0, 1, 1], [], []>, precision = #tpu.contract_precision<fp32>} : vector<16x8xf32>, vector<8x32xf32>, vector<16x32xf32> -> vector<16x32xf32>
    %134 = arith.addf %132, %133 : vector<16x32xf32>
    %135 = arith.mulf %83, %88 : vector<16x32xf32>
    %cst_56 = arith.constant dense<0.000000e+00> : vector<16x32xf32>
    %136 = tpu.matmul %87, %129, %cst_56 {dimension_numbers = #tpu.dot_dimension_numbers<[1], [0], [0], [1], [0, 0, 1, 1], [], []>, precision = #tpu.contract_precision<fp32>} : vector<16x8xf32>, vector<8x32xf32>, vector<16x32xf32> -> vector<16x32xf32>
    %137 = arith.addf %135, %136 : vector<16x32xf32>
    %c16_57 = arith.constant 16 : index
    %c0_58 = arith.constant 0 : index
    %138 = vector.load %arg7[%c16_57, %c0_58] : memref<24x16xf32, #tpu.memory_space<vmem>>, vector<8x16xf32>
    %c16_59 = arith.constant 16 : index
    %c0_60 = arith.constant 0 : index
    %139 = vector.load %arg8[%c16_59, %c0_60] : memref<24x16xf32, #tpu.memory_space<vmem>>, vector<8x16xf32>
    %c16_61 = arith.constant 16 : index
    %c0_62 = arith.constant 0 : index
    %140 = vector.load %arg9[%c16_61, %c0_62] : memref<24x16xf32, #tpu.memory_space<vmem>>, vector<8x16xf32>
    %c32_63 = arith.constant 32 : index
    %c0_64 = arith.constant 0 : index
    %141 = vector.load %arg10[%c32_63, %c0_64] : memref<48x8xf32, #tpu.memory_space<vmem>>, vector<16x8xf32>
    %c32_65 = arith.constant 32 : index
    %c0_66 = arith.constant 0 : index
    %142 = vector.load %arg11[%c32_65, %c0_66] : memref<48x32xf32, #tpu.memory_space<vmem>>, vector<16x32xf32>
    %cst_67 = arith.constant dense<0.000000e+00> : vector<8x32xf32>
    %143 = tpu.matmul %138, %134, %cst_67 {dimension_numbers = #tpu.dot_dimension_numbers<[1], [0], [0], [1], [0, 0, 1, 1], [], []>, precision = #tpu.contract_precision<fp32>} : vector<8x16xf32>, vector<16x32xf32>, vector<8x32xf32> -> vector<8x32xf32>
    %cst_68 = arith.constant dense<0.000000e+00> : vector<8x32xf32>
    %144 = tpu.matmul %139, %134, %cst_68 {dimension_numbers = #tpu.dot_dimension_numbers<[1], [0], [0], [1], [0, 0, 1, 1], [], []>, precision = #tpu.contract_precision<fp32>} : vector<8x16xf32>, vector<16x32xf32>, vector<8x32xf32> -> vector<8x32xf32>
    %145 = arith.addf %138, %139 : vector<8x16xf32>
    %cst_69 = arith.constant dense<0.000000e+00> : vector<8x32xf32>
    %146 = tpu.matmul %145, %137, %cst_69 {dimension_numbers = #tpu.dot_dimension_numbers<[1], [0], [0], [1], [0, 0, 1, 1], [], []>, precision = #tpu.contract_precision<fp32>} : vector<8x16xf32>, vector<16x32xf32>, vector<8x32xf32> -> vector<8x32xf32>
    %cst_70 = arith.constant dense<0.000000e+00> : vector<8x128xf32>
    %147 = tpu.matmul %140, %20, %cst_70 {dimension_numbers = #tpu.dot_dimension_numbers<[1], [0], [0], [1], [0, 0, 1, 1], [], []>, precision = #tpu.contract_precision<fp32>} : vector<8x16xf32>, vector<16x128xf32>, vector<8x128xf32> -> vector<8x128xf32>
    %148 = arith.truncf %143 : vector<8x32xf32> to vector<8x32xbf16>
    %cst_71 = arith.constant dense<0.000000e+00> : vector<8x160xf32>
    %149 = tpu.matmul %148, %27, %cst_71 {dimension_numbers = #tpu.dot_dimension_numbers<[1], [0], [0], [1], [0, 0, 1, 1], [], []>} : vector<8x32xbf16>, vector<32x160xbf16>, vector<8x160xf32> -> vector<8x160xf32>
    %150 = arith.truncf %144 : vector<8x32xf32> to vector<8x32xbf16>
    %cst_72 = arith.constant dense<0.000000e+00> : vector<8x160xf32>
    %151 = tpu.matmul %150, %28, %cst_72 {dimension_numbers = #tpu.dot_dimension_numbers<[1], [0], [0], [1], [0, 0, 1, 1], [], []>} : vector<8x32xbf16>, vector<32x160xbf16>, vector<8x160xf32> -> vector<8x160xf32>
    %152 = arith.addf %149, %151 : vector<8x160xf32>
    %153 = arith.addf %152, %29 : vector<8x160xf32>
    %154 = vector.extract_strided_slice %147 {offsets = [0, 0], sizes = [8, 96], strides = [1, 1]} : vector<8x128xf32> to vector<8x96xf32>
    %155 = vector.extract_strided_slice %153 {offsets = [0, 0], sizes = [8, 96], strides = [1, 1]} : vector<8x160xf32> to vector<8x96xf32>
    %156 = arith.addf %154, %155 : vector<8x96xf32>
    %157 = vector.extract_strided_slice %147 {offsets = [0, 96], sizes = [8, 32], strides = [1, 1]} : vector<8x128xf32> to vector<8x32xf32>
    %158 = vector.extract_strided_slice %153 {offsets = [0, 96], sizes = [8, 32], strides = [1, 1]} : vector<8x160xf32> to vector<8x32xf32>
    %159 = arith.addf %157, %158 : vector<8x32xf32>
    %160 = vector.extract_strided_slice %153 {offsets = [0, 128], sizes = [8, 32], strides = [1, 1]} : vector<8x160xf32> to vector<8x32xf32>
    %161 = arith.addf %159, %160 : vector<8x32xf32>
    %162 = arith.negf %161 : vector<8x32xf32>
    %163 = math.exp %162 : vector<8x32xf32>
    %cst_73 = arith.constant 1.000000e+00 : f32
    %164 = vector.broadcast %cst_73 : f32 to vector<8x32xf32>
    %165 = arith.addf %164, %163 : vector<8x32xf32>
    %166 = arith.divf %164, %165 : vector<8x32xf32>
    %167 = arith.mulf %166, %146 : vector<8x32xf32>
    %168 = vector.extract_strided_slice %156 {offsets = [0, 0], sizes = [8, 32], strides = [1, 1]} : vector<8x96xf32> to vector<8x32xf32>
    %169 = arith.negf %168 : vector<8x32xf32>
    %170 = math.exp %169 : vector<8x32xf32>
    %cst_74 = arith.constant 1.000000e+00 : f32
    %171 = vector.broadcast %cst_74 : f32 to vector<8x32xf32>
    %172 = arith.addf %171, %170 : vector<8x32xf32>
    %173 = arith.divf %171, %172 : vector<8x32xf32>
    %174 = vector.extract_strided_slice %156 {offsets = [0, 32], sizes = [8, 32], strides = [1, 1]} : vector<8x96xf32> to vector<8x32xf32>
    %175 = arith.negf %174 : vector<8x32xf32>
    %176 = math.exp %175 : vector<8x32xf32>
    %cst_75 = arith.constant 1.000000e+00 : f32
    %177 = vector.broadcast %cst_75 : f32 to vector<8x32xf32>
    %178 = arith.addf %177, %176 : vector<8x32xf32>
    %179 = arith.divf %177, %178 : vector<8x32xf32>
    %180 = vector.extract_strided_slice %156 {offsets = [0, 64], sizes = [8, 32], strides = [1, 1]} : vector<8x96xf32> to vector<8x32xf32>
    %181 = math.tanh %180 : vector<8x32xf32>
    %182 = arith.mulf %173, %181 : vector<8x32xf32>
    %183 = arith.addf %182, %167 : vector<8x32xf32>
    %184 = math.tanh %183 : vector<8x32xf32>
    %185 = arith.mulf %179, %184 : vector<8x32xf32>
    %186 = arith.mulf %134, %142 : vector<16x32xf32>
    %cst_76 = arith.constant dense<0.000000e+00> : vector<16x32xf32>
    %187 = tpu.matmul %141, %185, %cst_76 {dimension_numbers = #tpu.dot_dimension_numbers<[1], [0], [0], [1], [0, 0, 1, 1], [], []>, precision = #tpu.contract_precision<fp32>} : vector<16x8xf32>, vector<8x32xf32>, vector<16x32xf32> -> vector<16x32xf32>
    %188 = arith.addf %186, %187 : vector<16x32xf32>
    %c0_77 = arith.constant 0 : index
    %c0_78 = arith.constant 0 : index
    %189 = vector.load %arg12[%c0_77, %c0_78] : memref<16x32xf32, #tpu.memory_space<vmem>>, vector<16x32xf32>
    tpu.vector_store %arg12[%c0_77, %c0_78], %188 {strides = array<i32>} : memref<16x32xf32, #tpu.memory_space<vmem>>, vector<16x32xf32>,
    return
  }
  func.func @transform_0(%arg0: i32) -> (i32, i32) {
    %c0_i32 = arith.constant 0 : i32
    %c0_i32_0 = arith.constant 0 : i32
    %c0_i32_1 = arith.constant 0 : i32
    return %c0_i32, %c0_i32_0 : i32, i32
  }
  func.func @transform_1(%arg0: i32) -> (i32, i32) {
    %c0_i32 = arith.constant 0 : i32
    %c0_i32_0 = arith.constant 0 : i32
    %c0_i32_1 = arith.constant 0 : i32
    return %c0_i32, %c0_i32_0 : i32, i32
  }
  func.func @transform_2(%arg0: i32) -> (i32, i32) {
    %c0_i32 = arith.constant 0 : i32
    %c0_i32_0 = arith.constant 0 : i32
    %c0_i32_1 = arith.constant 0 : i32
    return %c0_i32, %c0_i32_0 : i32, i32
  }
  func.func @transform_3(%arg0: i32) -> (i32, i32) {
    %c0_i32 = arith.constant 0 : i32
    %c0_i32_0 = arith.constant 0 : i32
    %c0_i32_1 = arith.constant 0 : i32
    return %c0_i32, %c0_i32_0 : i32, i32
  }
  func.func @transform_4(%arg0: i32) -> (i32, i32) {
    %c0_i32 = arith.constant 0 : i32
    %c0_i32_0 = arith.constant 0 : i32
    %c0_i32_1 = arith.constant 0 : i32
    return %c0_i32, %c0_i32_0 : i32, i32
  }
  func.func @transform_5(%arg0: i32) -> (i32, i32) {
    %c0_i32 = arith.constant 0 : i32
    %c0_i32_0 = arith.constant 0 : i32
    %c0_i32_1 = arith.constant 0 : i32
    return %c0_i32, %c0_i32_0 : i32, i32
  }
  func.func @transform_6(%arg0: i32) -> (i32, i32) {
    %c0_i32 = arith.constant 0 : i32
    %c0_i32_0 = arith.constant 0 : i32
    %c0_i32_1 = arith.constant 0 : i32
    return %c0_i32, %c0_i32_0 : i32, i32
  }
  func.func @transform_7(%arg0: i32) -> (i32, i32) {
    %c0_i32 = arith.constant 0 : i32
    %c0_i32_0 = arith.constant 0 : i32
    %c0_i32_1 = arith.constant 0 : i32
    return %c0_i32, %c0_i32_0 : i32, i32
  }
  func.func @transform_8(%arg0: i32) -> (i32, i32) {
    %c0_i32 = arith.constant 0 : i32
    %c0_i32_0 = arith.constant 0 : i32
    %c0_i32_1 = arith.constant 0 : i32
    return %c0_i32, %c0_i32_0 : i32, i32
  }
  func.func @transform_9(%arg0: i32) -> (i32, i32) {
    %c0_i32 = arith.constant 0 : i32
    %c0_i32_0 = arith.constant 0 : i32
    %c0_i32_1 = arith.constant 0 : i32
    return %c0_i32, %c0_i32_0 : i32, i32
  }
  func.func @transform_10(%arg0: i32) -> (i32, i32) {
    %c0_i32 = arith.constant 0 : i32
    %c0_i32_0 = arith.constant 0 : i32
    %c0_i32_1 = arith.constant 0 : i32
    return %c0_i32, %c0_i32_0 : i32, i32
  }
  func.func @transform_11(%arg0: i32) -> (i32, i32) {
    %c0_i32 = arith.constant 0 : i32
    %c0_i32_0 = arith.constant 0 : i32
    %c0_i32_1 = arith.constant 0 : i32
    return %c0_i32, %c0_i32_0 : i32, i32
  }
}

</mosaic_0001>

<bundles_post_ra>
// kernel: eq.62
= control target key start
LH: loop header
LB: loop body
LE: loop exit
PB: predicated region body
PF: predicated region fallthrough
CT: control target
= control target key end

     0   :  { %s43_s10 = smov 64   ;;  %s44_s11 = smov 32   ;;  %vm3_vm0 = vcmask 130048   ;;  %vm9_vm1 = vcmask 654848   ;;  %vm15_vm2 = vcmask 523648   ;;  %vm21_vm3 = vcmask 392448   ;;  %s75_s0 = inlined_call_operand.vmem [shape: s32[5,16], index: 0, kind: input, shape index: {}]   ;;  %s76_s1 = inlined_call_operand.vmem [shape: s32[80], index: 1, kind: output, shape index: {}]  }
   0x1   :  { %v35_v0 = vld [vmem:[%s75_s0 + $0x4] sm:$0x1]   ;;  %v37_v1 = vld [vmem:[%s75_s0 + $0x2] sm:$0x1]   ;;  %v36_v2 = vld [vmem:[%s75_s0 + $0x3] sm:$0x1]  }
   0x2   :  { %7 = vrot.lane.b32.xlu0 %v35_v0, %s43_s10  ;;  %19 = vrot.lane.b32.xlu1 %v37_v1, %s44_s11  ;;  %v38_v3 = vld [vmem:[%s75_s0 + $0x1] sm:$0x1]   ;;  %v2_v4 = vld [vmem:[%s75_s0] sm:$0x1]   ;;  %s45_s0 = smov 48   ;;  %s46_s18 = smov 16  }
   0x3   :  { %4 = vst.msk [vmem:[#allocation0] sm:$0x1] %vm3_vm0, %v2_v4   ;;  %vm27_vm4 = vcmask 261248  }
   0x6   :  { %13 = vrot.lane.b32.xlu0 %v36_v2, %s45_s0  ;;  %25 = vrot.lane.b32.xlu1 %v38_v3, %s46_s18 }
  0x74   :  { %v8_v5 = vpop.permute.xlu0 %7   ;;  %v20_v6 = vpop.permute.xlu1 %19  }
  0x75   :  { %10 = vst.msk [vmem:[#allocation0] sm:$0x1] %vm9_vm1, %v8_v5  }
  0x78   :  { %v14_v7 = vpop.permute.xlu0 %13   ;;  %v26_v8 = vpop.permute.xlu1 %25  }
  0x79   :  { %16 = vst.msk [vmem:[#allocation0] sm:$0x1] %vm15_vm2, %v14_v7  }
  0x7a   :  { %22 = vst.msk [vmem:[#allocation0] sm:$0x1] %vm21_vm3, %v20_v6  }
  0x7b   :  { %28 = vst.msk [vmem:[#allocation0] sm:$0x1] %vm27_vm4, %v26_v8  }
  0x82   :  { %v32_v9 = vld [vmem:[#allocation0] sm:$0x1] }
  0x83   :  { %34 = vst [vmem:[%s76_s1] sm:$0x1] %v32_v9 }

// kernel: tree_lstm_forward_pallas.1
= control target key start
LH: loop header
LB: loop body
LE: loop exit
PB: predicated region body
PF: predicated region fallthrough
CT: control target
= control target key end

     0   :  { %v10414_v0 = vmov 0.0   ;;  %vm10415_vm0 = vmmov 0   ;;  %vm82_vm1 = vcmask 130048   ;;  %s10418_s21 = smov 32   ;;  %v10419_v49 = vmov 0.0|0.0   ;;  %s11394_s2 = inlined_call_operand.vmem [shape: bf16[16,128], index: 2, kind: input, shape index: {}]   ;;  %s11395_s0 = inlined_call_operand.vmem [shape: bf16[80,16], index: 0, kind: input, shape index: {}]   ;;  %s11396_s1 = inlined_call_operand.vmem [shape: f32[80,128], index: 1, kind: input, shape index: {}]   ;;  %s11397_s3 = inlined_call_operand.vmem [shape: bf16[64,128], index: 3, kind: input, shape index: {}]   ;;  %s11398_s7 = inlined_call_operand.vmem [shape: f32[24,16], index: 7, kind: input, shape index: {}]   ;;  %s11399_s6 = inlined_call_operand.vmem [shape: f32[24,16], index: 6, kind: input, shape index: {}]   ;;  %s11400_s4 = inlined_call_operand.vmem [shape: bf16[64,160], index: 4, kind: input, shape index: {}]   ;;  %s11401_s8 = inlined_call_operand.vmem [shape: f32[24,16], index: 8, kind: input, shape index: {}]   ;;  %s11402_s5 = inlined_call_operand.vmem [shape: f32[8,160], index: 5, kind: input, shape index: {}]   ;;  %s11403_s9 = inlined_call_operand.vmem [shape: f32[48,8], index: 9, kind: input, shape index: {}]   ;;  %s11404_s10 = inlined_call_operand.vmem [shape: f32[48,32], index: 10, kind: input, shape index: {}]   ;;  %s11405_s11 = inlined_call_operand.vmem [shape: f32[16,32], index: 11, kind: output, shape index: {}]  }
   0x1   :  { %9287 = vmatprep.subr.bf16.mxu0 %v10414_v0  ;;  %v10346_v1 = vld [vmem:[%s11394_s2] sm:$0xff]   ;;  %9289 = vmatprep.mubr.msk.bf16.mxu0 %vm10415_vm0, %v10414_v0  ;;  %v10348_v3 = vld [vmem:[%s11395_s0 + $0x8] sm:$0xff]   ;;  %v10349_v4 = vld [vmem:[%s11395_s0 + $0x10] sm:$0xff]   ;;  %s10417_s2 = smov 64   ;;  %vm343_vm2 = vcmask 261120   ;;  %vm2466_vm3 = vcmask 64512  }
   0x2   :  { %v10347_v2 = vld [vmem:[%s11395_s0] sm:$0xff]   ;;  %9309 = vmatprep.subr.bf16.mxu1 %v10414_v0  ;;  %9313 = vmatprep.mubr.msk.bf16.mxu1 %vm10415_vm0, %v10414_v0  ;;  %v10350_v5 = vld [vmem:[%s11395_s0 + $0x18] sm:$0xff]   ;;  %v172_v9 = vld [vmem:[%s11396_s1 + $0x8] sm:$0xff] }
   0x3   :  { %9288 = vmatpush3.bf16.msra.mxu0 %v10346_v1  ;;  %v10351_v6 = vld [vmem:[%s11395_s0 + $0x20] sm:$0xff]   ;;  %s10416_s0 = smov 96   ;;  %v173_v15 = vld [vmem:[%s11396_s1 + $0x10] sm:$0xff]  ;;  %v10353_v20 = vld [vmem:[%s11397_s3 + $0x18] sm:$0xff]  }
   0x4   :  { %v171_v7 = vld [vmem:[%s11396_s1] sm:$0xff]  ;;  %v10352_v16 = vld [vmem:[%s11397_s3 + $0x10] sm:$0xff]   ;;  %v174_v22 = vld [vmem:[%s11396_s1 + $0x18] sm:$0xff]  ;;  %9985 = vmatprep.subr.bf16.mxu0 %v10419_v49 }
   0x5   :  { %9310 = vmatpush3.bf16.msra.mxu1 %v10352_v16  ;;  %v175_v27 = vld [vmem:[%s11396_s1 + $0x20] sm:$0xff]  ;;  %v176_v29 = vld [vmem:[%s11396_s1 + $0x28] sm:$0xff]  ;;  %v177_v37 = vld [vmem:[%s11396_s1 + $0x30] sm:$0xff] }
   0x6   :  { %9290 = vmatmul.mubr.msk.bf16.vlgmr.msra.gmra.mrb[0].mxu0 %vm82_vm1, %v10347_v2  ;;  %9311 = vmatprep.subr.bf16.mxu1 %v10414_v0  ;;  %v178_v38 = vld [vmem:[%s11396_s1 + $0x38] sm:$0xff]  ;;  %v179_v45 = vld [vmem:[%s11396_s1 + $0x40] sm:$0xff]  ;;  %v180_v46 = vld [vmem:[%s11396_s1 + $0x48] sm:$0xff] }
   0x7   :  { %9293 = vmatprep.mubr.msk.bf16.mxu0 %vm10415_vm0, %v10414_v0  ;;  %v10659_v16 = vld [vmem:[%s11398_s7] sm:$0xff] }
   0x9   :  { %9312 = vmatpush3.bf16.msra.mxu1 %v10353_v20 }
   0xa   :  { %9317 = vmatprep.subr.bf16.mxu1 %v10414_v0 }
   0xe   :  { %9294 = vmatmul.mubr.msk.bf16.gmra.mrb[4].mxu0 %vm82_vm1, %v10348_v3  ;;  %v10354_v3 = vld [vmem:[%s11397_s3] sm:$0xff]  }
   0xf   :  { %9297 = vmatprep.mubr.msk.bf16.mxu0 %vm10415_vm0, %v10414_v0 }
  0x16   :  { %9298 = vmatmul.mubr.msk.bf16.gmra.mrb[8].mxu0 %vm82_vm1, %v10349_v4 }
  0x17   :  { %9301 = vmatprep.mubr.msk.bf16.mxu0 %vm10415_vm0, %v10414_v0 }
  0x1e   :  { %9302 = vmatmul.mubr.msk.bf16.gmra.mrb[12].mxu0 %vm82_vm1, %v10350_v5 }
  0x1f   :  { %9305 = vmatprep.mubr.msk.bf16.mxu0 %vm10415_vm0, %v10414_v0 }
  0x26   :  { %9306 = vmatmul.mubr.msk.bf16.gmra.mrb[16].mxu0 %vm82_vm1, %v10351_v6 }
  0x27   :  { %9371 = vmatprep.mubr.msk.f32.mxu0 %vm10415_vm0, %v10414_v0 }
  0xd9   :  { %v132_v8 = vpop.f32.mrb[0].mxu0 }
  0xda   :  { %v10526_v10 = vmul.f32 %v171_v7, %v132_v8  ;;  %v9291_v11 = vpop.f32.mrb[1].mxu0  ;;  %v10355_v7 = vld [vmem:[%s11397_s3 + $0x8] sm:$0xff]  }
  0xdb   :  { %v135_v12 = vpop.f32.mrb[2].mxu0 }
  0xdc   :  { %v10528_v13 = vmul.f32 %v172_v9, %v135_v12  ;;  %201 = vrot.lane.b32.xlu0 %v10526_v10, %s10416_s0  ;;  %v9292_v14 = vpop.f32.mrb[3].mxu0 }
  0xde   :  { %203 = vrot.lane.b32.xlu1 %v10528_v13, %s10416_s0 }
  0xe1   :  { %v140_v17 = vpop.f32.mrb[4].mxu0 }
  0xe2   :  { %v10541_v18 = vmul.f32 %v173_v15, %v140_v17  ;;  %v9295_v19 = vpop.f32.mrb[5].mxu0 }
  0xe3   :  { %v143_v21 = vpop.f32.mrb[6].mxu0  ;;  %v928_v19 = vsel %vm82_vm1, %v10659_v16, 0 }
  0xe4   :  { %245 = vrot.lane.b32.xlu1 %v10541_v18, %s10417_s2  ;;  %205 = vrot.lane.b32.xlu0 %v10541_v18, %s10416_s0  ;;  %v9296_v23 = vpop.f32.mrb[7].mxu0  ;;  %v10553_v24 = vmul.f32 %v174_v22, %v143_v21  ;;  %v10663_v22 = vand.u32 4294901760, %v928_v19 }
  0xe8   :  { %285 = vrot.lane.b32.xlu0 %v10541_v18, %s10418_s21  ;;  %247 = vrot.lane.b32.xlu1 %v10553_v24, %s10417_s2 }
  0xe9   :  { %v148_v25 = vpop.f32.mrb[8].mxu0 }
  0xea   :  { %v9299_v26 = vpop.f32.mrb[9].mxu0  ;;  %v10570_v31 = vmul.f32 %v175_v27, %v148_v25  ;;  %v10670_v25 = vld [vmem:[%s11399_s6] sm:$0xff] }
  0xeb   :  { %v151_v28 = vpop.f32.mrb[10].mxu0 }
  0xec   :  { %287 = vrot.lane.b32.xlu1 %v10553_v24, %s10418_s21  ;;  %207 = vrot.lane.b32.xlu0 %v10553_v24, %s10416_s0  ;;  %v9300_v30 = vpop.f32.mrb[11].mxu0  ;;  %v10572_v32 = vmul.f32 %v176_v29, %v151_v28 }
  0xf0   :  { %209 = vrot.lane.b32.xlu0 %v10570_v31, %s10416_s0  ;;  %211 = vrot.lane.b32.xlu1 %v10572_v32, %s10416_s0 }
  0xf1   :  { %v156_v33 = vpop.f32.mrb[12].mxu0 }
  0xf2   :  { %v9303_v34 = vpop.f32.mrb[13].mxu0  ;;  %v10592_v40 = vmul.f32 %v177_v37, %v156_v33  ;;  %v466_v37 = vsel %vm82_vm1, %v10670_v25, 0 }
  0xf3   :  { %v159_v35 = vpop.f32.mrb[14].mxu0 }
  0xf4   :  { %249 = vrot.lane.b32.xlu0 %v10570_v31, %s10417_s2  ;;  %251 = vrot.lane.b32.xlu1 %v10572_v32, %s10417_s2  ;;  %v9304_v36 = vpop.f32.mrb[15].mxu0  ;;  %v10594_v41 = vmul.f32 %v178_v38, %v159_v35 }
  0xf5   :  { %v10675_v36 = vsub.f32 %v928_v19, %v10663_v22 }
  0xf8   :  { %289 = vrot.lane.b32.xlu0 %v10570_v31, %s10418_s21  ;;  %291 = vrot.lane.b32.xlu1 %v10572_v32, %s10418_s21 }
  0xf9   :  { %v164_v39 = vpop.f32.mrb[16].mxu0 }
  0xfa   :  { %v9307_v42 = vpop.f32.mrb[17].mxu0  ;;  %v10614_v47 = vmul.f32 %v179_v45, %v164_v39 }
  0xfb   :  { %v167_v43 = vpop.f32.mrb[18].mxu0 }
  0xfc   :  { %213 = vrot.lane.b32.xlu0 %v10592_v40, %s10416_s0  ;;  %215 = vrot.lane.b32.xlu1 %v10594_v41, %s10416_s0  ;;  %v9308_v44 = vpop.f32.mrb[19].mxu0  ;;  %v10616_v48 = vmul.f32 %v180_v46, %v167_v43  ;;  %v999_v46 = vand.u32 4294901760, %v10675_v36 }
 0x100   :  { %253 = vrot.lane.b32.xlu0 %v10592_v40, %s10417_s2  ;;  %255 = vrot.lane.b32.xlu1 %v10594_v41, %s10417_s2 }
 0x104   :  { %293 = vrot.lane.b32.xlu0 %v10592_v40, %s10418_s21  ;;  %295 = vrot.lane.b32.xlu1 %v10594_v41, %s10418_s21 }
 0x108   :  { %217 = vrot.lane.b32.xlu0 %v10614_v47, %s10416_s0  ;;  %219 = vrot.lane.b32.xlu1 %v10616_v48, %s10416_s0 }
 0x10c   :  { %257 = vrot.lane.b32.xlu0 %v10614_v47, %s10417_s2  ;;  %259 = vrot.lane.b32.xlu1 %v10616_v48, %s10417_s2 }
 0x110   :  { %297 = vrot.lane.b32.xlu0 %v10614_v47, %s10418_s21  ;;  %299 = vrot.lane.b32.xlu1 %v10616_v48, %s10418_s21 }
 0x114   :  { %241 = vrot.lane.b32.xlu0 %v10526_v10, %s10417_s2  ;;  %243 = vrot.lane.b32.xlu1 %v10528_v13, %s10417_s2 }
 0x118   :  { %281 = vrot.lane.b32.xlu0 %v10526_v10, %s10418_s21  ;;  %283 = vrot.lane.b32.xlu1 %v10528_v13, %s10418_s21 }
 0x14e   :  { %v10639_v50 = vpop.permute.xlu0 %201 }
 0x150   :  { %v10641_v51 = vpop.permute.xlu1 %203 }
 0x156   :  { %v246_v52 = vpop.permute.xlu1 %245  ;;  %v206_v53 = vpop.permute.xlu0 %205 }
 0x157   :  { %v233_v56 = vadd.f32 %v206_v53, %v10541_v18 }
 0x159   :  { %v273_v59 = vadd.f32 %v246_v52, %v233_v56  ;;  %v10682_v52 = vand.u32 4294901760, %v466_v37 }
 0x15a   :  { %v286_v54 = vpop.permute.xlu0 %285  ;;  %v248_v55 = vpop.permute.xlu1 %247 }
 0x15b   :  { %v313_v1 = vadd.f32 %v286_v54, %v273_v59 }
 0x15e   :  { %v288_v57 = vpop.permute.xlu1 %287  ;;  %v208_v58 = vpop.permute.xlu0 %207 }
 0x15f   :  { %v234_v60 = vadd.f32 %v208_v58, %v10553_v24 }
 0x161   :  { %v274_v61 = vadd.f32 %v248_v55, %v234_v60  ;;  %v1000_v60 = vsub.f32 %v10675_v36, %v999_v46 }
 0x162   :  { %v210_v62 = vpop.permute.xlu0 %209  ;;  %v212_v63 = vpop.permute.xlu1 %211 }
 0x163   :  { %v314_v2 = vadd.f32 %v288_v57, %v274_v61  ;;  %v235_v26 = vadd.f32 %v210_v62, %v10570_v31  ;;  %v236_v27 = vadd.f32 %v212_v63, %v10572_v32  ;;  %v10694_v61 = vsub.f32 %v466_v37, %v10682_v52  ;;  %v10813_v37 = vld [vmem:[%s11400_s4 + $0x4] ss:$8 sps:$4 sm:$0xff]  }
 0x164   :  { %v232_v62 = vadd.f32 %v10641_v51, %v10528_v13 }
 0x165   :  { %v330_v4 = vpack.c.bf16 %v314_v2, %v313_v1 }
 0x166   :  { %v250_v5 = vpop.permute.xlu0 %249  ;;  %v252_v6 = vpop.permute.xlu1 %251 }
 0x167   :  { %9314 = vmatmul.mubr.msk.bf16.vlgmr.msra.gmra.mrb[0].mxu1 %vm343_vm2, %v330_v4  ;;  %v275_v30 = vadd.f32 %v250_v5, %v235_v26  ;;  %v276_v33 = vadd.f32 %v252_v6, %v236_v27  ;;  %v1389_v26 = vadd.f32 %v10659_v16, %v10670_v25 }
 0x168   :  { %9318 = vmatpush3.bf16.msra.mxu1 %v10354_v3  ;;  %9321 = vmatprep.mubr.msk.bf16.mxu1 %vm10415_vm0, %v10414_v0 }
 0x169   :  { %9319 = vmatprep.subr.bf16.mxu1 %v10414_v0  ;;  %v1391_v27 = vsel %vm82_vm1, %v1389_v26, 0 }
 0x16a   :  { %v290_v8 = vpop.permute.xlu0 %289  ;;  %v292_v9 = vpop.permute.xlu1 %291 }
 0x16b   :  { %v316_v32 = vadd.f32 %v292_v9, %v276_v33  ;;  %v10793_v33 = vld [vmem:[%s11400_s4 + $0x20] ss:$8 sps:$4 sm:$0xff]  }
 0x16c   :  { %9320 = vmatpush3.bf16.msra.mxu1 %v10355_v7  ;;  %v1001_v7 = vand.u32 4294901760, %v1000_v60 }
 0x16d   :  { %9967 = vmatprep.subr.bf16.mxu1 %v10419_v49 }
 0x16e   :  { %v214_v11 = vpop.permute.xlu0 %213  ;;  %v216_v12 = vpop.permute.xlu1 %215 }
 0x16f   :  { %v237_v23 = vadd.f32 %v214_v11, %v10592_v40  ;;  %v238_v24 = vadd.f32 %v216_v12, %v10594_v41  ;;  %v315_v41 = vadd.f32 %v290_v8, %v275_v30  ;;  %v537_v8 = vand.u32 4294901760, %v10694_v61 }
 0x171   :  { %v538_v19 = vsub.f32 %v10694_v61, %v537_v8 }
 0x172   :  { %v254_v14 = vpop.permute.xlu0 %253  ;;  %v256_v15 = vpop.permute.xlu1 %255 }
 0x173   :  { %v277_v28 = vadd.f32 %v254_v14, %v237_v23  ;;  %v278_v29 = vadd.f32 %v256_v15, %v238_v24 }
 0x176   :  { %v294_v17 = vpop.permute.xlu0 %293  ;;  %v296_v18 = vpop.permute.xlu1 %295 }
 0x177   :  { %v317_v38 = vadd.f32 %v294_v17, %v277_v28  ;;  %v318_v39 = vadd.f32 %v296_v18, %v278_v29  ;;  %v1458_v28 = vand.u32 4294901760, %v1391_v27 }
 0x179   :  { %v444_v53 = vmax.f32 %v315_v41, %v317_v38  ;;  %v445_v54 = vmax.f32 %v316_v32, %v318_v39  ;;  %v1459_v16 = vsub.f32 %v1391_v27, %v1458_v28  ;;  %v460_v38 = vld [vmem:[%s11401_s8] sm:$0xff] }
 0x17a   :  { %v218_v20 = vpop.permute.xlu0 %217  ;;  %v220_v21 = vpop.permute.xlu1 %219  ;;  %v1827_v39 = vsel %vm82_vm1, %v460_v38, 0 }
 0x17b   :  { %v239_v40 = vadd.f32 %v218_v20, %v10614_v47  ;;  %v240_v31 = vadd.f32 %v220_v21, %v10616_v48  ;;  %v231_v47 = vadd.f32 %v10639_v50, %v10526_v10  ;;  %v539_v21 = vand.u32 4294901760, %v538_v19  ;;  %v10874_v19 = vld [vmem:[%s11402_s5] sm:$0xff] }
 0x17c   :  { %v1460_v25 = vand.u32 4294901760, %v1459_v16 }
 0x17e   :  { %v258_v34 = vpop.permute.xlu0 %257  ;;  %v260_v35 = vpop.permute.xlu1 %259  ;;  %v1461_v29 = vsub.f32 %v1459_v16, %v1460_v25 }
 0x17f   :  { %v279_v42 = vadd.f32 %v258_v34, %v239_v40  ;;  %v280_v43 = vadd.f32 %v260_v35, %v240_v31  ;;  %v10799_v34 = vld [vmem:[%s11400_s4 + $0x30] ss:$8 sps:$4 sm:$0xff]   ;;  %v10804_v35 = vld [vmem:[%s11400_s4 + $0x34] ss:$8 sps:$4 sm:$0xff]   ;;  %v1896_v40 = vand.u32 4294901760, %v1827_v39 }
 0x180   :  { %v1462_v30 = vand.u32 4294901760, %v1461_v29 }
 0x181   :  { %v1897_v31 = vsub.f32 %v1827_v39, %v1896_v40 }
 0x182   :  { %v298_v44 = vpop.permute.xlu0 %297  ;;  %v300_v45 = vpop.permute.xlu1 %299 }
 0x183   :  { %v319_v55 = vadd.f32 %v298_v44, %v279_v42  ;;  %v320_v56 = vadd.f32 %v300_v45, %v280_v43  ;;  %v1898_v41 = vand.u32 4294901760, %v1897_v31 }
 0x185   :  { %v10684_v57 = vmax.f32 %v444_v53, %v319_v55  ;;  %v10686_v58 = vmax.f32 %v445_v54, %v320_v56  ;;  %v1899_v45 = vsub.f32 %v1897_v31, %v1898_v41 }
 0x186   :  { %v242_v48 = vpop.permute.xlu0 %241  ;;  %v244_v59 = vpop.permute.xlu1 %243 }
 0x187   :  { %v469_v63 = vand.u32 4294901760, %v10684_v57  ;;  %v472_v1 = vand.u32 4294901760, %v10686_v58  ;;  %v271_v2 = vadd.f32 %v242_v48, %v231_v47  ;;  %v272_v4 = vadd.f32 %v244_v59, %v232_v62 }
 0x188   :  { %v1900_v47 = vand.u32 4294901760, %v1899_v45 }
 0x189   :  { %v547_v3 = vsub.f32 %v10684_v57, %v469_v63  ;;  %v10701_v10 = vpack.c.bf16 %v472_v1, %v469_v63  ;;  %v554_v50 = vsub.f32 %v10686_v58, %v472_v1 }
 0x18a   :  { %v282_v5 = vpop.permute.xlu0 %281  ;;  %v284_v6 = vpop.permute.xlu1 %283 }
 0x18b   :  { %v548_v9 = vand.u32 4294901760, %v547_v3  ;;  %v555_v11 = vand.u32 4294901760, %v554_v50  ;;  %v311_v13 = vadd.f32 %v282_v5, %v271_v2  ;;  %v312_v51 = vadd.f32 %v284_v6, %v272_v4  ;;  %9987 = vmatpush3.bf16.msra.mxu0 %v10701_v10  ;;  %v10854_v5 = vld [vmem:[%s11400_s4 + $0x14] ss:$8 sps:$4 sm:$0xff]   ;;  %v10862_v6 = vld [vmem:[%s11400_s4 + $0x10] ss:$8 sps:$4 sm:$0xff]  }
 0x18c   :  { %9988 = vmatprep.subr.bf16.mxu0 %v10419_v49  ;;  %v9974_v23 = vpack.c.bf16 %v554_v50, %v547_v3 }
 0x18d   :  { %v325_v12 = vpack.c.bf16 %v312_v51, %v311_v13  ;;  %v549_v14 = vsub.f32 %v547_v3, %v548_v9  ;;  %v556_v15 = vsub.f32 %v554_v50, %v555_v11  ;;  %v9980_v24 = vpack.c.bf16 %v555_v11, %v548_v9 }
 0x18e   :  { %9372 = vmatmul.mubr.f32.vlgmr.msra.gmra.mrb[20].mxu0 %v1001_v7 }
 0x18f   :  { %9322 = vmatmul.mubr.msk.bf16.vlgmr.msra.gmra.mrb[0].mxu1 %vm343_vm2, %v325_v12  ;;  %v550_v17 = vand.u32 4294901760, %v549_v14  ;;  %v557_v18 = vand.u32 4294901760, %v556_v15  ;;  %9378 = vmatprep.mubr.msk.f32.mxu0 %vm10415_vm0, %v10414_v0 }
 0x190   :  { %9969 = vmatpush3.bf16.msra.mxu1 %v10701_v10  ;;  %9329 = vmatprep.mubr.msk.f32.mxu1 %vm10415_vm0, %v10414_v0 }
 0x191   :  { %v9971_v20 = vpack.c.bf16 %v557_v18, %v550_v17  ;;  %9970 = vmatprep.subr.bf16.mxu1 %v10419_v49 }
 0x193   :  { %9990 = vmatpush3.bf16.msra.mxu0 %v9971_v20 }
 0x194   :  { %9991 = vmatprep.subr.bf16.mxu0 %v10419_v49 }
 0x196   :  { %9379 = vmatmul.mubr.f32.vlgmr.msra.gmra.mrb[20].mxu0 %v10663_v22 }
 0x197   :  { %9330 = vmatmul.mubr.f32.vlgmr.msra.gmra.mrb[4].mxu1 %v539_v21  ;;  %9993 = vmatpush3.bf16.msra.mxu0 %v9974_v23 }
 0x198   :  { %9972 = vmatpush3.bf16.msra.mxu1 %v9971_v20  ;;  %9385 = vmatprep.mubr.msk.f32.mxu0 %vm10415_vm0, %v10414_v0 }
 0x199   :  { %9994 = vmatprep.subr.bf16.mxu0 %v10419_v49  ;;  %9336 = vmatprep.mubr.msk.f32.mxu1 %vm10415_vm0, %v10414_v0 }
 0x19a   :  { %9973 = vmatprep.subr.bf16.mxu1 %v10419_v49 }
 0x19e   :  { %9386 = vmatmul.mubr.f32.vlgmr.msra.gmra.mrb[20].mxu0 %v10675_v36  ;;  %v10420_v36 = vmov 0  }
 0x19f   :  { %9996 = vmatpush3.bf16.msra.mxu0 %v10701_v10  ;;  %9337 = vmatmul.mubr.f32.vlgmr.msra.gmra.mrb[4].mxu1 %v10682_v52 }
 0x1a0   :  { %9975 = vmatpush3.bf16.msra.mxu1 %v9974_v23  ;;  %9392 = vmatprep.mubr.msk.f32.mxu0 %vm10415_vm0, %v10414_v0  ;;  %v10879_v23 = vld [vmem:[%s11402_s5 + $0x8] sm:$0xff] }
 0x1a1   :  { %9997 = vmatprep.subr.bf16.mxu0 %v10419_v49  ;;  %9343 = vmatprep.mubr.msk.f32.mxu1 %vm10415_vm0, %v10414_v0 }
 0x1a2   :  { %9976 = vmatprep.subr.bf16.mxu1 %v10419_v49 }
 0x1a6   :  { %9393 = vmatmul.mubr.f32.vlgmr.msra.gmra.mrb[20].mxu0 %v999_v46 }
 0x1a7   :  { %9999 = vmatpush3.bf16.msra.mxu0 %v9980_v24  ;;  %9344 = vmatmul.mubr.f32.vlgmr.msra.gmra.mrb[4].mxu1 %v10694_v61 }
 0x1a8   :  { %9978 = vmatpush3.bf16.msra.mxu1 %v10701_v10  ;;  %9399 = vmatprep.mubr.msk.f32.mxu0 %vm10415_vm0, %v10414_v0 }
 0x1a9   :  { %10000 = vmatprep.subr.bf16.mxu0 %v10419_v49  ;;  %9350 = vmatprep.mubr.msk.f32.mxu1 %vm10415_vm0, %v10414_v0 }
 0x1aa   :  { %9979 = vmatprep.subr.bf16.mxu1 %v10419_v49 }
 0x1ae   :  { %9400 = vmatmul.mubr.f32.vlgmr.msra.gmra.mrb[20].mxu0 %v10663_v22 }
 0x1af   :  { %10002 = vmatpush3.bf16.msra.mxu0 %v10701_v10  ;;  %9351 = vmatmul.mubr.f32.vlgmr.msra.gmra.mrb[4].mxu1 %v537_v8 }
 0x1b0   :  { %9981 = vmatpush3.bf16.msra.mxu1 %v9980_v24  ;;  %9406 = vmatprep.mubr.msk.f32.mxu0 %vm10415_vm0, %v10414_v0 }
 0x1b1   :  { %9357 = vmatprep.mubr.msk.f32.mxu1 %vm10415_vm0, %v10414_v0  ;;  %9982 = vmatprep.subr.bf16.mxu1 %v10419_v49 }
 0x1b2   :  { %10003 = vmatprep.subr.bf16.mxu0 %v10419_v49 }
 0x1b6   :  { %9407 = vmatmul.mubr.f32.vlgmr.msra.gmra.mrb[20].mxu0 %v10663_v22  ;;  %v10788_v22 = vld [vmem:[%s11400_s4 + $0x24] ss:$8 sps:$4 sm:$0xff]  }
 0x1b7   :  { %9358 = vmatmul.mubr.f32.vlgmr.msra.gmra.mrb[4].mxu1 %v10682_v52  ;;  %9443 = vmatprep.mubr.msk.f32.mxu0 %vm10415_vm0, %v10414_v0 }
 0x1b8   :  { %9984 = vmatpush3.bf16.msra.mxu1 %v10701_v10  ;;  %9364 = vmatprep.mubr.msk.f32.mxu1 %vm10415_vm0, %v10414_v0  ;;  %v10849_v10 = vld [vmem:[%s11400_s4] ss:$8 sps:$4 sm:$0xff]  }
 0x1b9   :  { %9409 = vmatprep.subr.mxu1 %v10414_v0 }
 0x1bf   :  { %9365 = vmatmul.mubr.f32.vlgmr.msra.gmra.mrb[4].mxu1 %v10682_v52 }
 0x1c0   :  { %9410 = vmatpush3.msra.mxu1 %v10414_v0  ;;  %9411 = vmatprep.mubr.msk.f32.mxu1 %vm10415_vm0, %v10414_v0 }
 0x1c1   :  { %9414 = vmatprep.subr.mxu1 %v10414_v0 }
 0x1c3   :  { %9412 = vmatmul.mubr.f32.vlgmr.msra.gmra.mrb[6].mxu1 %v1462_v30 }
 0x1c4   :  { %9415 = vmatpush3.msra.mxu1 %v10414_v0  ;;  %9416 = vmatprep.mubr.msk.f32.mxu1 %vm10415_vm0, %v10414_v0 }
 0x1c5   :  { %9419 = vmatprep.subr.mxu1 %v10414_v0 }
 0x1cb   :  { %9417 = vmatmul.mubr.f32.vlgmr.msra.gmra.mrb[6].mxu1 %v1458_v28 }
 0x1cc   :  { %9420 = vmatpush3.msra.mxu1 %v10414_v0  ;;  %9421 = vmatprep.mubr.msk.f32.mxu1 %vm10415_vm0, %v10414_v0 }
 0x1cd   :  { %9424 = vmatprep.subr.mxu1 %v10414_v0 }
 0x1d3   :  { %9422 = vmatmul.mubr.f32.vlgmr.msra.gmra.mrb[6].mxu1 %v1459_v16 }
 0x1d4   :  { %9425 = vmatpush3.msra.mxu1 %v10414_v0  ;;  %9426 = vmatprep.mubr.msk.f32.mxu1 %vm10415_vm0, %v10414_v0 }
 0x1d5   :  { %9429 = vmatprep.subr.mxu1 %v10414_v0 }
 0x1db   :  { %9427 = vmatmul.mubr.f32.vlgmr.msra.gmra.mrb[6].mxu1 %v1460_v25 }
 0x1dc   :  { %9430 = vmatpush3.msra.mxu1 %v10414_v0  ;;  %9431 = vmatprep.mubr.msk.f32.mxu1 %vm10415_vm0, %v10414_v0 }
 0x1dd   :  { %9434 = vmatprep.subr.mxu1 %v10414_v0 }
 0x1e3   :  { %9432 = vmatmul.mubr.f32.vlgmr.msra.gmra.mrb[6].mxu1 %v1458_v28 }
 0x1e4   :  { %9435 = vmatpush3.msra.mxu1 %v10414_v0  ;;  %9436 = vmatprep.mubr.msk.f32.mxu1 %vm10415_vm0, %v10414_v0 }
 0x1e5   :  { %2313 = vmatprep.subr.bf16.mxu1 %v10788_v22 }
 0x1eb   :  { %9437 = vmatmul.mubr.f32.vlgmr.msra.gmra.mrb[6].mxu1 %v1458_v28 }
 0x1ec   :  { %2314 = vmatpush1.bf16.msra.mxu1 %v10793_v33  ;;  %2345 = vmatprep.mubr.bf16.mxu1 %v10420_v36 }
 0x1ed   :  { %2315 = vmatprep.subr.bf16.mxu1 %v10804_v35 }
 0x1f0   :  { %2316 = vmatpush1.bf16.msra.mxu1 %v10799_v34 }
 0x1f1   :  { %2377 = vmatprep.subr.bf16.mxu1 %v10813_v37 }
 0x262   :  { %v437_v32 = vpop.f32.mrb[0].mxu1 }
 0x263   :  { %v1830_v42 = vand.u32 4294901760, %v437_v32  ;;  %v9323_v43 = vpop.f32.mrb[1].mxu1 }
 0x264   :  { %v440_v44 = vpop.f32.mrb[2].mxu1 }
 0x265   :  { %v1908_v46 = vsub.f32 %v437_v32, %v1830_v42  ;;  %v1833_v52 = vand.u32 4294901760, %v440_v44  ;;  %v9324_v53 = vpop.f32.mrb[3].mxu1 }
 0x267   :  { %v1909_v54 = vand.u32 4294901760, %v1908_v46  ;;  %v10820_v55 = vpack.c.bf16 %v1833_v52, %v1830_v42  ;;  %v1915_v56 = vsub.f32 %v440_v44, %v1833_v52 }
 0x269   :  { %v1910_v48 = vsub.f32 %v1908_v46, %v1909_v54  ;;  %v1916_v59 = vand.u32 4294901760, %v1915_v56  ;;  %v10822_v60 = vpack.c.bf16 %v1915_v56, %v1908_v46  ;;  %10005 = vmatpush3.bf16.msra.mxu0 %v10820_v55 }
 0x26a   :  { %10006 = vmatprep.subr.bf16.mxu0 %v10419_v49 }
 0x26b   :  { %v1917_v61 = vsub.f32 %v1915_v56, %v1916_v59  ;;  %v10826_v62 = vpack.c.bf16 %v1916_v59, %v1909_v54  ;;  %v1911_v63 = vand.u32 4294901760, %v1910_v48  ;;  %v462_v59 = vld [vmem:[%s11403_s9 + $0x8] sm:$0xff] }
 0x26c   :  { %9444 = vmatmul.mubr.f32.vlgmr.msra.gmra.mrb[22].mxu0 %v1900_v47 }
 0x26d   :  { %v1918_v1 = vand.u32 4294901760, %v1917_v61  ;;  %9450 = vmatprep.mubr.msk.f32.mxu0 %vm10415_vm0, %v10414_v0 }
 0x26f   :  { %v10830_v2 = vpack.c.bf16 %v1918_v1, %v1911_v63  ;;  %v2471_v63 = vsel %vm2466_vm3, %v462_v59, 0 }
 0x270   :  { %v10904_v1 = vand.u32 4294901760, %v2471_v63 }
 0x271   :  { %10008 = vmatpush3.bf16.msra.mxu0 %v10830_v2 }
 0x272   :  { %10009 = vmatprep.subr.bf16.mxu0 %v10419_v49 }
 0x274   :  { %9451 = vmatmul.mubr.f32.vlgmr.msra.gmra.mrb[22].mxu0 %v1896_v40 }
 0x275   :  { %10011 = vmatpush3.bf16.msra.mxu0 %v10822_v60  ;;  %9457 = vmatprep.mubr.msk.f32.mxu0 %vm10415_vm0, %v10414_v0 }
 0x276   :  { %10012 = vmatprep.subr.bf16.mxu0 %v10419_v49 }
 0x27c   :  { %9458 = vmatmul.mubr.f32.vlgmr.msra.gmra.mrb[22].mxu0 %v1897_v31  ;;  %v461_v31 = vld [vmem:[%s11403_s9] sm:$0xff] }
 0x27d   :  { %10014 = vmatpush3.bf16.msra.mxu0 %v10820_v55  ;;  %9464 = vmatprep.mubr.msk.f32.mxu0 %vm10415_vm0, %v10414_v0 }
 0x27e   :  { %10015 = vmatprep.subr.bf16.mxu0 %v10419_v49 }
 0x284   :  { %9465 = vmatmul.mubr.f32.vlgmr.msra.gmra.mrb[22].mxu0 %v1898_v41  ;;  %v2468_v41 = vsel %vm2466_vm3, %v461_v31, 0 }
 0x285   :  { %10017 = vmatpush3.bf16.msra.mxu0 %v10826_v62  ;;  %9471 = vmatprep.mubr.msk.f32.mxu0 %vm10415_vm0, %v10414_v0  ;;  %v10889_v32 = vand.u32 4294901760, %v2468_v41 }
 0x286   :  { %10018 = vmatprep.subr.bf16.mxu0 %v10419_v49 }
 0x287   :  { %v10892_v44 = vsub.f32 %v2468_v41, %v10889_v32 }
 0x289   :  { %v1385_v3 = vpop.f32.mrb[20].mxu0  ;;  %v10895_v45 = vand.u32 4294901760, %v10892_v44 }
 0x28a   :  { %v2289_v50 = vpack.c.bf16 %v1385_v3, %v1385_v3  ;;  %v9408_v4 = vpop.f32.mrb[21].mxu0  ;;  %v2550_v3 = vsub.f32 %v2471_v63, %v10904_v1 }
 0x28b   :  { %v2542_v46 = vsub.f32 %v10892_v44, %v10895_v45 }
 0x28c   :  { %9472 = vmatmul.mubr.f32.vlgmr.msra.gmra.mrb[22].mxu0 %v1896_v40  ;;  %8959 = vmatmul.mubr.msk.bf16.vlgmr.msra.gmra.mrb[8].mxu1 %vm343_vm2, %v2289_v50  ;;  %v10907_v50 = vand.u32 4294901760, %v2550_v3 }
 0x28d   :  { %10020 = vmatpush3.bf16.msra.mxu0 %v10820_v55  ;;  %2378 = vmatpush1.bf16.msra.mxu1 %v10849_v10  ;;  %v2543_v52 = vand.u32 4294901760, %v2542_v46  ;;  %v463_v46 = vld [vmem:[%s11404_s10] sm:$0xff] }
 0x28e   :  { %2379 = vmatprep.subr.bf16.mxu1 %v10854_v5  ;;  %2409 = vmatprep.mubr.bf16.mxu1 %v10420_v36 }
 0x28f   :  { %9478 = vmatprep.mubr.msk.f32.mxu0 %vm10415_vm0, %v10414_v0 }
 0x291   :  { %2380 = vmatpush1.bf16.msra.mxu1 %v10862_v6 }
 0x292   :  { %v923_v7 = vpop.f32.mrb[4].mxu1 }
 0x293   :  { %v2288_v8 = vpack.c.bf16 %v923_v7, %v923_v7  ;;  %v9366_v9 = vpop.f32.mrb[5].mxu1 }
 0x294   :  { %9479 = vmatmul.mubr.f32.vlgmr.msra.gmra.mrb[22].mxu0 %v1896_v40  ;;  %v2552_v9 = vsub.f32 %v2550_v3, %v10907_v50 }
 0x295   :  { %8964 = vmatmul.mubr.msk.bf16.vlgmr.msra.gmra.mrb[12].mxu1 %vm343_vm2, %v2288_v8  ;;  %9483 = vmatprep.mubr.f32.mxu0 %v2543_v52 }
 0x296   :  { %9513 = vmatprep.mubr.f32.mxu1 %v2543_v52 }
 0x2be   :  { %v1822_v11 = vpop.f32.mrb[6].mxu1 }
 0x2bf   :  { %v9438_v13 = vpop.f32.mrb[7].mxu1  ;;  %2433 = vrot.lane.b32.xlu1 %v1822_v11, %s10416_s0 }
 0x331   :  { %v2434_v54 = vpop.permute.xlu1 %2433 }
 0x35f   :  { %v2347_v51 = vpop.f32.mrb[8].mxu1 }
 0x360   :  { %v2349_v12 = vpop.f32.mrb[9].mxu1 }
 0x361   :  { %v2351_v14 = vpop.f32.mrb[10].mxu1 }
 0x362   :  { %v2352_v15 = vpop.f32.mrb[11].mxu1 }
 0x367   :  { %v2284_v17 = vpop.f32.mrb[22].mxu0 }
 0x368   :  { %v2411_v18 = vpop.f32.mrb[12].mxu1  ;;  %v9480_v20 = vpop.f32.mrb[23].mxu0 }
 0x369   :  { %v2412_v21 = vadd.f32 %v2411_v18, %v2347_v51  ;;  %v2413_v24 = vpop.f32.mrb[13].mxu1 }
 0x36a   :  { %v2414_v26 = vadd.f32 %v2413_v24, %v2349_v12  ;;  %v2415_v27 = vpop.f32.mrb[14].mxu1  ;;  %v2553_v12 = vand.u32 4294901760, %v2552_v9 }
 0x36b   :  { %v2416_v28 = vpop.f32.mrb[15].mxu1  ;;  %v2418_v16 = vadd.f32 %v2412_v21, %v10874_v19 }
 0x36c   :  { %v2419_v25 = vadd.f32 %v2414_v26, %v10879_v23 }
 0x36d   :  { %v2420_v29 = vadd.f32 %v2418_v16, %v2284_v17 }
 0x36e   :  { %2422 = vrot.lane.b32.xlu0 %v2419_v25, %s10416_s0 }
 0x36f   :  { %10368 = vtanh.f32 %v2420_v29  ;;  %v8966_v47 = vmul.f32 -1.442695, %v2420_v29 }
 0x379   :  { %v10369_v30 = vpop.eup %10368 }
 0x37a   :  { %2445 = vrot.lane.b32.xlu0 %v10369_v30, %s10417_s2 }
 0x3e0   :  { %v2423_v38 = vpop.permute.xlu0 %2422 }
 0x3e1   :  { %v2425_v39 = vadd.f32 %v2423_v38, %v2420_v29 }
 0x3e3   :  { %v8965_v40 = vmul.f32 -1.442695, %v2425_v39  ;;  %v10943_v39 = vld [vmem:[%s11399_s6 + $0x8] sm:$0xff] }
 0x3e4   :  { %v3465_v31 = vsel %vm82_vm1, %v10943_v39, 0 }
 0x3e5   :  { %10370 = vpow2.f32 %v8965_v40  ;;  %v10948_v40 = vld [vmem:[%s11398_s7 + $0x8] sm:$0xff] }
 0x3e6   :  { %v3927_v41 = vsel %vm82_vm1, %v10948_v40, 0 }
 0x3ec   :  { %v2446_v4 = vpop.permute.xlu0 %2445 }
 0x3ef   :  { %v10371_v42 = vpop.eup %10370 }
 0x3f0   :  { %v2429_v43 = vadd.f32 1.0, %v10371_v42  ;;  %v10956_v42 = vand.u32 4294901760, %v3927_v41 }
 0x3f2   :  { %10372 = vrcp.f32 %v2429_v43 }
 0x3f3   :  { %10374 = vpow2.f32 %v8966_v47  ;;  %v2460_v47 = vmul.f32 %v463_v46, %v10684_v57 }
 0x3fc   :  { %v10373_v53 = vpop.eup %10372 }
 0x3fd   :  { %v2436_v56 = vmul.f32 %v10373_v53, %v2434_v54  ;;  %v10375_v48 = vpop.eup %10374 }
 0x3fe   :  { %v2440_v61 = vadd.f32 1.0, %v10375_v48 }
 0x3ff   :  { %2450 = vrot.lane.b32.xlu1 %v2436_v56, %s10418_s21 }
 0x400   :  { %10376 = vrcp.f32 %v2440_v61 }
 0x40a   :  { %v10377_v7 = vpop.eup %10376 }
 0x40b   :  { %v2448_v8 = vmul.f32 %v10377_v7, %v2446_v4 }
 0x471   :  { %v2451_v11 = vpop.permute.xlu1 %2450 }
 0x472   :  { %v2453_v13 = vadd.f32 %v2451_v11, %v2448_v8 }
 0x474   :  { %10378 = vtanh.f32 %v2453_v13  ;;  %v2967_v51 = vand.u32 4294901760, %v2453_v13 }
 0x476   :  { %v3054_v14 = vsub.f32 %v2453_v13, %v2967_v51  ;;  %9511 = vmatprep.subr.mxu1 %v2967_v51 }
 0x477   :  { %9512 = vmatpush3.msra.mxu1 %v2967_v51 }
 0x478   :  { %9514 = vmatmul.mubr.f32.vlgmr.msra.gmra.mrb[16].mxu1 %v2553_v12  ;;  %v3055_v15 = vand.u32 4294901760, %v3054_v14 }
 0x479   :  { %9518 = vmatprep.mubr.f32.mxu1 %v10889_v32 }
 0x47a   :  { %v3056_v17 = vsub.f32 %v3054_v14, %v3055_v15 }
 0x47c   :  { %v3057_v18 = vand.u32 4294901760, %v3056_v17 }
 0x47e   :  { %v10379_v20 = vpop.eup %10378  ;;  %9516 = vmatprep.subr.mxu1 %v3057_v18 }
 0x47f   :  { %9517 = vmatpush3.msra.mxu1 %v3057_v18  ;;  %2456 = vrot.lane.b32.xlu0 %v10379_v20, %s10418_s21 }
 0x480   :  { %9519 = vmatmul.mubr.f32.vlgmr.msra.gmra.mrb[16].mxu1 %v10904_v1  ;;  %9521 = vmatprep.subr.mxu1 %v3054_v14 }
 0x481   :  { %9522 = vmatpush3.msra.mxu1 %v3054_v14  ;;  %9523 = vmatprep.mubr.f32.mxu1 %v10892_v44 }
 0x482   :  { %9526 = vmatprep.subr.mxu1 %v2967_v51 }
 0x488   :  { %9524 = vmatmul.mubr.f32.vlgmr.msra.gmra.mrb[16].mxu1 %v2550_v3 }
 0x489   :  { %9527 = vmatpush3.msra.mxu1 %v2967_v51  ;;  %9528 = vmatprep.mubr.f32.mxu1 %v10895_v45 }
 0x48a   :  { %9531 = vmatprep.subr.mxu1 %v3055_v15 }
 0x490   :  { %9529 = vmatmul.mubr.f32.vlgmr.msra.gmra.mrb[16].mxu1 %v10907_v50 }
 0x491   :  { %9532 = vmatpush3.msra.mxu1 %v3055_v15  ;;  %9533 = vmatprep.mubr.f32.mxu1 %v10889_v32 }
 0x492   :  { %9536 = vmatprep.subr.mxu1 %v2967_v51 }
 0x498   :  { %9534 = vmatmul.mubr.f32.vlgmr.msra.gmra.mrb[16].mxu1 %v10904_v1 }
 0x499   :  { %9537 = vmatpush3.msra.mxu1 %v2967_v51  ;;  %9538 = vmatprep.mubr.f32.mxu1 %v10889_v32 }
 0x49a   :  { %10039 = vmatprep.subr.bf16.mxu1 %v10419_v49 }
 0x4a0   :  { %9539 = vmatmul.mubr.f32.vlgmr.msra.gmra.mrb[16].mxu1 %v10904_v1 }
 0x4a1   :  { %9587 = vmatprep.mubr.msk.f32.mxu1 %vm10415_vm0, %v10414_v0 }
 0x4f1   :  { %v2457_v21 = vpop.permute.xlu0 %2456 }
 0x4f2   :  { %v2459_v24 = vmul.f32 %v10377_v7, %v2457_v21  ;;  %v2964_v21 = vmul.f32 0.0, %v463_v46 }
 0x4f4   :  { %2463 = vrot.lane.b32.xlu1 %v2459_v24, %s10416_s0  ;;  %v3459_v24 = vld [vmem:[%s11401_s8 + $0x8] sm:$0xff] }
 0x566   :  { %v2464_v26 = vpop.permute.xlu1 %2463 }
 0x567   :  { %v2474_v27 = vand.u32 4294901760, %v2464_v26 }
 0x569   :  { %v2561_v28 = vsub.f32 %v2464_v26, %v2474_v27  ;;  %9481 = vmatprep.subr.mxu0 %v2474_v27 }
 0x56a   :  { %9482 = vmatpush3.msra.mxu0 %v2474_v27 }
 0x56b   :  { %9484 = vmatmul.mubr.f32.vlgmr.msra.gmra.mrb[24].mxu0 %v2553_v12  ;;  %v2562_v16 = vand.u32 4294901760, %v2561_v28 }
 0x56c   :  { %9488 = vmatprep.mubr.f32.mxu0 %v10889_v32 }
 0x56d   :  { %v2563_v25 = vsub.f32 %v2561_v28, %v2562_v16 }
 0x56f   :  { %v2564_v29 = vand.u32 4294901760, %v2563_v25 }
 0x571   :  { %9486 = vmatprep.subr.mxu0 %v2564_v29 }
 0x572   :  { %9487 = vmatpush3.msra.mxu0 %v2564_v29 }
 0x573   :  { %9489 = vmatmul.mubr.f32.vlgmr.msra.gmra.mrb[24].mxu0 %v10904_v1  ;;  %9491 = vmatprep.subr.mxu0 %v2561_v28  ;;  %v10936_v30 = vpop.f32.mrb[16].mxu1 }
 0x574   :  { %9492 = vmatpush3.msra.mxu0 %v2561_v28  ;;  %9493 = vmatprep.mubr.f32.mxu0 %v10892_v44  ;;  %v10938_v38 = vpop.f32.mrb[17].mxu1  ;;  %v10962_v44 = vsub.f32 %v3927_v41, %v10956_v42  ;;  %v4388_v28 = vadd.f32 %v10948_v40, %v10943_v39 }
 0x575   :  { %9496 = vmatprep.subr.mxu0 %v2474_v27 }
 0x576   :  { %v3998_v54 = vand.u32 4294901760, %v10962_v44 }
 0x57b   :  { %9494 = vmatmul.mubr.f32.vlgmr.msra.gmra.mrb[24].mxu0 %v2550_v3 }
 0x57c   :  { %9497 = vmatpush3.msra.mxu0 %v2474_v27  ;;  %9498 = vmatprep.mubr.f32.mxu0 %v10895_v45  ;;  %v464_v45 = vld [vmem:[%s11404_s10 + $0x8] sm:$0xff] }
 0x57d   :  { %9501 = vmatprep.subr.mxu0 %v2562_v16  ;;  %v2461_v52 = vmul.f32 %v464_v45, %v10686_v58  ;;  %v3999_v58 = vsub.f32 %v10962_v44, %v3998_v54  ;;  %v2965_v20 = vmul.f32 0.0, %v464_v45 }
 0x57f   :  { %v4000_v9 = vand.u32 4294901760, %v3999_v58  ;;  %v11020_v26 = vadd.f32 %v10936_v30, %v2965_v20 }
 0x581   :  { %v4396_v25 = vand.u32 4294901760, %v11020_v26 }
 0x583   :  { %9499 = vmatmul.mubr.f32.vlgmr.msra.gmra.mrb[24].mxu0 %v10907_v50  ;;  %v4478_v39 = vsub.f32 %v11020_v26, %v4396_v25 }
 0x584   :  { %9502 = vmatpush3.msra.mxu0 %v2562_v16  ;;  %9503 = vmatprep.mubr.f32.mxu0 %v10889_v32  ;;  %v4852_v16 = vsel %vm82_vm1, %v3459_v24, 0 }
 0x585   :  { %9506 = vmatprep.subr.mxu0 %v2474_v27  ;;  %v11033_v30 = vand.u32 4294901760, %v4852_v16 }
 0x587   :  { %v4922_v41 = vsub.f32 %v4852_v16, %v11033_v30 }
 0x589   :  { %v4923_v46 = vand.u32 4294901760, %v4922_v41 }
 0x58b   :  { %9504 = vmatmul.mubr.f32.vlgmr.msra.gmra.mrb[24].mxu0 %v10904_v1 }
 0x58c   :  { %9507 = vmatpush3.msra.mxu0 %v2474_v27  ;;  %9508 = vmatprep.mubr.f32.mxu0 %v10889_v32  ;;  %v10954_v32 = vand.u32 4294901760, %v3465_v31  ;;  %v11023_v27 = vadd.f32 %v10938_v38, %v2964_v21 }
 0x58d   :  { %10021 = vmatprep.subr.bf16.mxu0 %v10419_v49 }
 0x58e   :  { %v10959_v43 = vsub.f32 %v3465_v31, %v10954_v32  ;;  %v4393_v29 = vand.u32 4294901760, %v11023_v27  ;;  %v4390_v31 = vsel %vm82_vm1, %v4388_v28, 0 }
 0x58f   :  { %v11038_v38 = vand.u32 4294901760, %v4390_v31 }
 0x590   :  { %v3536_v53 = vand.u32 4294901760, %v10959_v43  ;;  %v4471_v40 = vsub.f32 %v11023_v27, %v4393_v29 }
 0x592   :  { %v4472_v45 = vand.u32 4294901760, %v4471_v40 }
 0x593   :  { %9509 = vmatmul.mubr.f32.vlgmr.msra.gmra.mrb[24].mxu0 %v10904_v1  ;;  %v3537_v1 = vsub.f32 %v10959_v43, %v3536_v53 }
 0x594   :  { %9545 = vmatprep.mubr.msk.f32.mxu0 %vm10415_vm0, %v10414_v0 }
 0x595   :  { %v3538_v8 = vand.u32 4294901760, %v3537_v1 }
 0x666   :  { %v9510_v56 = vpop.f32.mrb[24].mxu0 }
 0x667   :  { %v10974_v48 = vadd.f32 %v9510_v56, %v2461_v52  ;;  %v2952_v59 = vpop.f32.mrb[25].mxu0  ;;  %v4924_v56 = vsub.f32 %v4922_v41, %v4923_v46 }
 0x668   :  { %v10976_v61 = vadd.f32 %v2952_v59, %v2460_v47  ;;  %v10058_v47 = vpack.c.bf16 %v4396_v25, %v4393_v29  ;;  %v3460_v29 = vld [vmem:[%s11403_s9 + $0x10] sm:$0xff] }
 0x669   :  { %v3471_v63 = vand.u32 4294901760, %v10974_v48  ;;  %v4925_v58 = vand.u32 4294901760, %v4924_v56 }
 0x66a   :  { %v3468_v3 = vand.u32 4294901760, %v10976_v61 }
 0x66b   :  { %v3553_v50 = vsub.f32 %v10974_v48, %v3471_v63 }
 0x66c   :  { %v10985_v4 = vpack.c.bf16 %v3471_v63, %v3468_v3  ;;  %v3546_v57 = vsub.f32 %v10976_v61, %v3468_v3 }
 0x66d   :  { %v3554_v7 = vand.u32 4294901760, %v3553_v50 }
 0x66e   :  { %v3547_v11 = vand.u32 4294901760, %v3546_v57  ;;  %10023 = vmatpush3.bf16.msra.mxu0 %v10985_v4  ;;  %10041 = vmatpush3.bf16.msra.mxu1 %v10985_v4  ;;  %v10028_v13 = vpack.c.bf16 %v3553_v50, %v3546_v57 }
 0x66f   :  { %v3555_v51 = vsub.f32 %v3553_v50, %v3554_v7  ;;  %10024 = vmatprep.subr.bf16.mxu0 %v10419_v49  ;;  %10042 = vmatprep.subr.bf16.mxu1 %v10419_v49 }
 0x670   :  { %v3548_v12 = vsub.f32 %v3546_v57, %v3547_v11  ;;  %v10034_v14 = vpack.c.bf16 %v3554_v7, %v3547_v11 }
 0x671   :  { %9546 = vmatmul.mubr.f32.vlgmr.msra.gmra.mrb[26].mxu0 %v3538_v8  ;;  %9588 = vmatmul.mubr.f32.vlgmr.msra.gmra.mrb[18].mxu1 %v4000_v9  ;;  %v3556_v15 = vand.u32 4294901760, %v3555_v51 }
 0x672   :  { %v3549_v17 = vand.u32 4294901760, %v3548_v12  ;;  %9552 = vmatprep.mubr.msk.f32.mxu0 %vm10415_vm0, %v10414_v0  ;;  %9594 = vmatprep.mubr.msk.f32.mxu1 %vm10415_vm0, %v10414_v0 }
 0x674   :  { %v10025_v18 = vpack.c.bf16 %v3556_v15, %v3549_v17 }
 0x676   :  { %10026 = vmatpush3.bf16.msra.mxu0 %v10025_v18  ;;  %10044 = vmatpush3.bf16.msra.mxu1 %v10025_v18 }
 0x677   :  { %10027 = vmatprep.subr.bf16.mxu0 %v10419_v49  ;;  %10045 = vmatprep.subr.bf16.mxu1 %v10419_v49 }
 0x679   :  { %9553 = vmatmul.mubr.f32.vlgmr.msra.gmra.mrb[26].mxu0 %v10954_v32  ;;  %9595 = vmatmul.mubr.f32.vlgmr.msra.gmra.mrb[18].mxu1 %v10956_v42 }
 0x67a   :  { %10029 = vmatpush3.bf16.msra.mxu0 %v10028_v13  ;;  %10047 = vmatpush3.bf16.msra.mxu1 %v10028_v13 }
 0x67b   :  { %9559 = vmatprep.mubr.msk.f32.mxu0 %vm10415_vm0, %v10414_v0  ;;  %10030 = vmatprep.subr.bf16.mxu0 %v10419_v49 }
 0x67c   :  { %9601 = vmatprep.mubr.msk.f32.mxu1 %vm10415_vm0, %v10414_v0  ;;  %10048 = vmatprep.subr.bf16.mxu1 %v10419_v49 }
 0x681   :  { %9560 = vmatmul.mubr.f32.vlgmr.msra.gmra.mrb[26].mxu0 %v10959_v43  ;;  %9602 = vmatmul.mubr.f32.vlgmr.msra.gmra.mrb[18].mxu1 %v10962_v44  ;;  %v4460_v43 = vsub.f32 %v4390_v31, %v11038_v38  ;;  %v4479_v44 = vand.u32 4294901760, %v4478_v39 }
 0x682   :  { %10032 = vmatpush3.bf16.msra.mxu0 %v10985_v4  ;;  %10050 = vmatpush3.bf16.msra.mxu1 %v10985_v4 }
 0x683   :  { %9566 = vmatprep.mubr.msk.f32.mxu0 %vm10415_vm0, %v10414_v0  ;;  %10033 = vmatprep.subr.bf16.mxu0 %v10419_v49  ;;  %v4461_v52 = vand.u32 4294901760, %v4460_v43 }
 0x684   :  { %9608 = vmatprep.mubr.msk.f32.mxu1 %vm10415_vm0, %v10414_v0  ;;  %10051 = vmatprep.subr.bf16.mxu1 %v10419_v49 }
 0x685   :  { %v4462_v59 = vsub.f32 %v4460_v43, %v4461_v52 }
 0x687   :  { %v4463_v3 = vand.u32 4294901760, %v4462_v59 }
 0x689   :  { %9567 = vmatmul.mubr.f32.vlgmr.msra.gmra.mrb[26].mxu0 %v3536_v53  ;;  %9609 = vmatmul.mubr.f32.vlgmr.msra.gmra.mrb[18].mxu1 %v3998_v54  ;;  %v4480_v53 = vsub.f32 %v4478_v39, %v4479_v44  ;;  %v4473_v54 = vsub.f32 %v4471_v40, %v4472_v45 }
 0x68a   :  { %10035 = vmatpush3.bf16.msra.mxu0 %v10034_v14  ;;  %10053 = vmatpush3.bf16.msra.mxu1 %v10034_v14 }
 0x68b   :  { %9573 = vmatprep.mubr.msk.f32.mxu0 %vm10415_vm0, %v10414_v0  ;;  %10036 = vmatprep.subr.bf16.mxu0 %v10419_v49  ;;  %v4474_v63 = vand.u32 4294901760, %v4473_v54  ;;  %v4481_v1 = vand.u32 4294901760, %v4480_v53  ;;  %v3461_v53 = vld [vmem:[%s11403_s9 + $0x18] sm:$0xff] }
 0x68c   :  { %9615 = vmatprep.mubr.msk.f32.mxu1 %vm10415_vm0, %v10414_v0  ;;  %10054 = vmatprep.subr.bf16.mxu1 %v10419_v49  ;;  %v5455_v56 = vsel %vm2466_vm3, %v3461_v53, 0 }
 0x68d   :  { %v10061_v50 = vpack.c.bf16 %v4481_v1, %v4474_v63 }
 0x691   :  { %9574 = vmatmul.mubr.f32.vlgmr.msra.gmra.mrb[26].mxu0 %v10954_v32  ;;  %9616 = vmatmul.mubr.f32.vlgmr.msra.gmra.mrb[18].mxu1 %v10956_v42 }
 0x692   :  { %10038 = vmatpush3.bf16.msra.mxu0 %v10985_v4  ;;  %10056 = vmatpush3.bf16.msra.mxu1 %v10985_v4 }
 0x693   :  { %9580 = vmatprep.mubr.msk.f32.mxu0 %vm10415_vm0, %v10414_v0  ;;  %9622 = vmatprep.mubr.msk.f32.mxu1 %vm10415_vm0, %v10414_v0 }
 0x694   :  { %10075 = vmatprep.subr.bf16.mxu1 %v10419_v49  ;;  %10057 = vmatprep.subr.bf16.mxu0 %v10419_v49 }
 0x699   :  { %9581 = vmatmul.mubr.f32.vlgmr.msra.gmra.mrb[26].mxu0 %v10954_v32  ;;  %9623 = vmatmul.mubr.f32.vlgmr.msra.gmra.mrb[18].mxu1 %v10956_v42  ;;  %v10064_v32 = vpack.c.bf16 %v4478_v39, %v4471_v40  ;;  %v10070_v42 = vpack.c.bf16 %v4479_v44, %v4472_v45 }
 0x69a   :  { %10077 = vmatpush3.bf16.msra.mxu1 %v10820_v55  ;;  %9671 = vmatprep.mubr.msk.f32.mxu1 %vm10415_vm0, %v10414_v0 }
 0x69b   :  { %10078 = vmatprep.subr.bf16.mxu1 %v10419_v49  ;;  %10059 = vmatpush3.bf16.msra.mxu0 %v10058_v47 }
 0x69c   :  { %9629 = vmatprep.mubr.msk.f32.mxu0 %vm10415_vm0, %v10414_v0  ;;  %10060 = vmatprep.subr.bf16.mxu0 %v10419_v49 }
 0x69d   :  { %9672 = vmatmul.mubr.f32.vlgmr.msra.gmra.mrb[20].mxu1 %v4925_v58 }
 0x69e   :  { %10080 = vmatpush3.bf16.msra.mxu1 %v10830_v2  ;;  %9678 = vmatprep.mubr.msk.f32.mxu1 %vm10415_vm0, %v10414_v0 }
 0x69f   :  { %10081 = vmatprep.subr.bf16.mxu1 %v10419_v49  ;;  %9630 = vmatmul.mubr.f32.vlgmr.msra.gmra.mrb[28].mxu0 %v4463_v3 }
 0x6a0   :  { %10062 = vmatpush3.bf16.msra.mxu0 %v10061_v50  ;;  %9636 = vmatprep.mubr.msk.f32.mxu0 %vm10415_vm0, %v10414_v0 }
 0x6a1   :  { %10063 = vmatprep.subr.bf16.mxu0 %v10419_v49 }
 0x6a5   :  { %9679 = vmatmul.mubr.f32.vlgmr.msra.gmra.mrb[20].mxu1 %v11033_v30 }
 0x6a6   :  { %10083 = vmatpush3.bf16.msra.mxu1 %v10822_v60  ;;  %9685 = vmatprep.mubr.msk.f32.mxu1 %vm10415_vm0, %v10414_v0 }
 0x6a7   :  { %10084 = vmatprep.subr.bf16.mxu1 %v10419_v49  ;;  %9637 = vmatmul.mubr.f32.vlgmr.msra.gmra.mrb[28].mxu0 %v11038_v38 }
 0x6a8   :  { %10065 = vmatpush3.bf16.msra.mxu0 %v10064_v32  ;;  %9643 = vmatprep.mubr.msk.f32.mxu0 %vm10415_vm0, %v10414_v0 }
 0x6a9   :  { %10066 = vmatprep.subr.bf16.mxu0 %v10419_v49 }
 0x6ad   :  { %9686 = vmatmul.mubr.f32.vlgmr.msra.gmra.mrb[20].mxu1 %v4922_v41 }
 0x6ae   :  { %10086 = vmatpush3.bf16.msra.mxu1 %v10820_v55  ;;  %9692 = vmatprep.mubr.msk.f32.mxu1 %vm10415_vm0, %v10414_v0 }
 0x6af   :  { %10087 = vmatprep.subr.bf16.mxu1 %v10419_v49  ;;  %9644 = vmatmul.mubr.f32.vlgmr.msra.gmra.mrb[28].mxu0 %v4460_v43 }
 0x6b0   :  { %10068 = vmatpush3.bf16.msra.mxu0 %v10058_v47  ;;  %9650 = vmatprep.mubr.msk.f32.mxu0 %vm10415_vm0, %v10414_v0 }
 0x6b1   :  { %10069 = vmatprep.subr.bf16.mxu0 %v10419_v49 }
 0x6b5   :  { %9693 = vmatmul.mubr.f32.vlgmr.msra.gmra.mrb[20].mxu1 %v4923_v46 }
 0x6b6   :  { %10089 = vmatpush3.bf16.msra.mxu1 %v10826_v62  ;;  %9699 = vmatprep.mubr.msk.f32.mxu1 %vm10415_vm0, %v10414_v0 }
 0x6b7   :  { %10090 = vmatprep.subr.bf16.mxu1 %v10419_v49  ;;  %9651 = vmatmul.mubr.f32.vlgmr.msra.gmra.mrb[28].mxu0 %v4461_v52 }
 0x6b8   :  { %10071 = vmatpush3.bf16.msra.mxu0 %v10070_v42  ;;  %9657 = vmatprep.mubr.msk.f32.mxu0 %vm10415_vm0, %v10414_v0 }
 0x6b9   :  { %10072 = vmatprep.subr.bf16.mxu0 %v10419_v49 }
 0x6bd   :  { %9700 = vmatmul.mubr.f32.vlgmr.msra.gmra.mrb[20].mxu1 %v11033_v30 }
 0x6be   :  { %10092 = vmatpush3.bf16.msra.mxu1 %v10820_v55  ;;  %9706 = vmatprep.mubr.msk.f32.mxu1 %vm10415_vm0, %v10414_v0 }
 0x6bf   :  { %9658 = vmatmul.mubr.f32.vlgmr.msra.gmra.mrb[28].mxu0 %v11038_v38  ;;  %5318 = vmatprep.subr.bf16.mxu1 %v10788_v22 }
 0x6c0   :  { %10074 = vmatpush3.bf16.msra.mxu0 %v10058_v47  ;;  %9664 = vmatprep.mubr.msk.f32.mxu0 %vm10415_vm0, %v10414_v0  ;;  %v11141_v47 = vand.u32 4294901760, %v5455_v56 }
 0x6c2   :  { %v11144_v59 = vsub.f32 %v5455_v56, %v11141_v47 }
 0x6c4   :  { %v11147_v63 = vand.u32 4294901760, %v11144_v59 }
 0x6c5   :  { %9707 = vmatmul.mubr.f32.vlgmr.msra.gmra.mrb[20].mxu1 %v11033_v30 }
 0x6c6   :  { %5319 = vmatpush1.bf16.msra.mxu1 %v10793_v33  ;;  %5350 = vmatprep.mubr.bf16.mxu1 %v10420_v36  ;;  %v5536_v50 = vsub.f32 %v11144_v59, %v11147_v63 }
 0x6c7   :  { %5320 = vmatprep.subr.bf16.mxu1 %v10804_v35  ;;  %9665 = vmatmul.mubr.f32.vlgmr.msra.gmra.mrb[28].mxu0 %v11038_v38 }
 0x6ca   :  { %5321 = vmatpush1.bf16.msra.mxu1 %v10799_v34 }
 0x6cb   :  { %5362 = vmatprep.subr.bf16.mxu1 %v10813_v37 }
 0x76c   :  { %v3922_v4 = vpop.f32.mrb[26].mxu0  ;;  %v4384_v22 = vpop.f32.mrb[18].mxu1 }
 0x76d   :  { %v5314_v57 = vpack.c.bf16 %v4384_v22, %v4384_v22  ;;  %v9582_v7 = vpop.f32.mrb[27].mxu0  ;;  %v9624_v8 = vpop.f32.mrb[19].mxu1  ;;  %v5313_v33 = vpack.c.bf16 %v3922_v4, %v3922_v4  ;;  %v5537_v22 = vand.u32 4294901760, %v5536_v50 }
 0x76f   :  { %8967 = vmatmul.mubr.msk.bf16.vlgmr.msra.gmra.mrb[24].mxu1 %vm343_vm2, %v5314_v57 }
 0x770   :  { %5363 = vmatpush1.bf16.msra.mxu1 %v10849_v10  ;;  %5394 = vmatprep.mubr.bf16.mxu1 %v10420_v36 }
 0x771   :  { %5364 = vmatprep.subr.bf16.mxu1 %v10854_v5 }
 0x774   :  { %5365 = vmatpush1.bf16.msra.mxu1 %v10862_v6 }
 0x777   :  { %8968 = vmatmul.mubr.msk.bf16.vlgmr.msra.gmra.mrb[28].mxu1 %vm343_vm2, %v5313_v33 }
 0x798   :  { %v5309_v34 = vpop.f32.mrb[20].mxu1 }
 0x799   :  { %v9708_v35 = vpop.f32.mrb[21].mxu1 }
 0x79a   :  { %v4847_v37 = vpop.f32.mrb[28].mxu0 }
 0x79b   :  { %v9666_v9 = vpop.f32.mrb[29].mxu0  ;;  %5418 = vrot.lane.b32.xlu1 %v4847_v37, %s10416_s0 }
 0x80d   :  { %v5419_v44 = vpop.permute.xlu1 %5418 }
 0x842   :  { %v5352_v11 = vpop.f32.mrb[24].mxu1 }
 0x843   :  { %v5354_v13 = vpop.f32.mrb[25].mxu1 }
 0x844   :  { %v5356_v51 = vpop.f32.mrb[26].mxu1 }
 0x845   :  { %v5357_v12 = vpop.f32.mrb[27].mxu1 }
 0x84a   :  { %v5396_v10 = vpop.f32.mrb[28].mxu1 }
 0x84b   :  { %v5397_v14 = vadd.f32 %v5396_v10, %v5352_v11  ;;  %v5398_v15 = vpop.f32.mrb[29].mxu1 }
 0x84c   :  { %v5399_v17 = vadd.f32 %v5398_v15, %v5354_v13  ;;  %v5400_v5 = vpop.f32.mrb[30].mxu1 }
 0x84d   :  { %v5403_v6 = vadd.f32 %v5397_v14, %v10874_v19  ;;  %v5401_v18 = vpop.f32.mrb[31].mxu1  ;;  %v5452_v19 = vsel %vm2466_vm3, %v3460_v29, 0  ;;  %v3463_v14 = vld [vmem:[%s11404_s10 + $0x18] sm:$0xff] }
 0x84e   :  { %v5404_v20 = vadd.f32 %v5399_v17, %v10879_v23  ;;  %v11126_v31 = vand.u32 4294901760, %v5452_v19  ;;  %v5949_v15 = vmul.f32 %v3463_v14, %v11020_v26  ;;  %v3462_v17 = vld [vmem:[%s11404_s10 + $0x10] sm:$0xff]  ;;  %v5446_v56 = vmul.f32 %v3463_v14, %v10974_v48 }
 0x84f   :  { %v5405_v21 = vadd.f32 %v5403_v6, %v5309_v34  ;;  %v5948_v6 = vmul.f32 %v3462_v17, %v11023_v27  ;;  %v6443_v14 = vld [vmem:[%s11401_s8 + $0x10] sm:$0xff] }
 0x850   :  { %5407 = vrot.lane.b32.xlu0 %v5404_v20, %s10416_s0  ;;  %v11129_v38 = vsub.f32 %v5452_v19, %v11126_v31 }
 0x851   :  { %10380 = vtanh.f32 %v5405_v21  ;;  %v8970_v46 = vmul.f32 -1.442695, %v5405_v21 }
 0x852   :  { %v11132_v39 = vand.u32 4294901760, %v11129_v38 }
 0x854   :  { %v5526_v40 = vsub.f32 %v11129_v38, %v11132_v39 }
 0x856   :  { %v5527_v41 = vand.u32 4294901760, %v5526_v40 }
 0x858   :  { %9741 = vmatprep.mubr.f32.mxu1 %v5527_v41  ;;  %9711 = vmatprep.mubr.f32.mxu0 %v5527_v41 }
 0x85b   :  { %v10381_v24 = vpop.eup %10380 }
 0x85c   :  { %5430 = vrot.lane.b32.xlu0 %v10381_v24, %s10417_s2 }
 0x8c2   :  { %v5408_v28 = vpop.permute.xlu0 %5407 }
 0x8c3   :  { %v5410_v16 = vadd.f32 %v5408_v28, %v5405_v21 }
 0x8c5   :  { %v8969_v25 = vmul.f32 -1.442695, %v5410_v16 }
 0x8c7   :  { %10382 = vpow2.f32 %v8969_v25 }
 0x8ce   :  { %v5431_v1 = vpop.permute.xlu0 %5430 }
 0x8d1   :  { %v10383_v23 = vpop.eup %10382 }
 0x8d2   :  { %v5414_v30 = vadd.f32 1.0, %v10383_v23 }
 0x8d4   :  { %10384 = vrcp.f32 %v5414_v30 }
 0x8d5   :  { %10386 = vpow2.f32 %v8970_v46 }
 0x8de   :  { %v10385_v43 = vpop.eup %10384 }
 0x8df   :  { %v5421_v45 = vmul.f32 %v10385_v43, %v5419_v44  ;;  %v10387_v52 = vpop.eup %10386  ;;  %v6442_v44 = vld [vmem:[%s11398_s7 + $0x10] sm:$0xff] }
 0x8e0   :  { %v5425_v54 = vadd.f32 1.0, %v10387_v52  ;;  %v6911_v46 = vsel %vm82_vm1, %v6442_v44, 0 }
 0x8e1   :  { %5435 = vrot.lane.b32.xlu1 %v5421_v45, %s10418_s21  ;;  %v11213_v52 = vand.u32 4294901760, %v6911_v46 }
 0x8e2   :  { %10388 = vrcp.f32 %v5425_v54 }
 0x8e3   :  { %v6981_v54 = vsub.f32 %v6911_v46, %v11213_v52 }
 0x8ec   :  { %v10389_v58 = vpop.eup %10388 }
 0x8ed   :  { %v5433_v3 = vmul.f32 %v10389_v58, %v5431_v1  ;;  %v5445_v1 = vmul.f32 %v3462_v17, %v10976_v61  ;;  %v7836_v17 = vsel %vm82_vm1, %v6443_v14, 0 }
 0x953   :  { %v5436_v32 = vpop.permute.xlu1 %5435 }
 0x954   :  { %v5438_v42 = vadd.f32 %v5436_v32, %v5433_v3 }
 0x956   :  { %10390 = vtanh.f32 %v5438_v42  ;;  %v5951_v4 = vand.u32 4294901760, %v5438_v42 }
 0x958   :  { %v6038_v57 = vsub.f32 %v5438_v42, %v5951_v4  ;;  %9739 = vmatprep.subr.mxu1 %v5951_v4 }
 0x959   :  { %9740 = vmatpush3.msra.mxu1 %v5951_v4 }
 0x95a   :  { %9742 = vmatmul.mubr.f32.vlgmr.msra.gmra.mrb[22].mxu1 %v5537_v22  ;;  %v6039_v7 = vand.u32 4294901760, %v6038_v57 }
 0x95b   :  { %9746 = vmatprep.mubr.f32.mxu1 %v11126_v31 }
 0x95c   :  { %v6040_v8 = vsub.f32 %v6038_v57, %v6039_v7 }
 0x95e   :  { %v6041_v33 = vand.u32 4294901760, %v6040_v8 }
 0x960   :  { %v10391_v34 = vpop.eup %10390  ;;  %9744 = vmatprep.subr.mxu1 %v6041_v33 }
 0x961   :  { %9745 = vmatpush3.msra.mxu1 %v6041_v33  ;;  %5441 = vrot.lane.b32.xlu0 %v10391_v34, %s10418_s21 }
 0x962   :  { %9747 = vmatmul.mubr.f32.vlgmr.msra.gmra.mrb[22].mxu1 %v11141_v47  ;;  %9749 = vmatprep.subr.mxu1 %v6038_v57 }
 0x963   :  { %9750 = vmatpush3.msra.mxu1 %v6038_v57  ;;  %9751 = vmatprep.mubr.f32.mxu1 %v11129_v38 }
 0x964   :  { %9754 = vmatprep.subr.mxu1 %v5951_v4 }
 0x96a   :  { %9752 = vmatmul.mubr.f32.vlgmr.msra.gmra.mrb[22].mxu1 %v11144_v59 }
 0x96b   :  { %9755 = vmatpush3.msra.mxu1 %v5951_v4  ;;  %9756 = vmatprep.mubr.f32.mxu1 %v11132_v39 }
 0x96c   :  { %9759 = vmatprep.subr.mxu1 %v6039_v7 }
 0x972   :  { %9757 = vmatmul.mubr.f32.vlgmr.msra.gmra.mrb[22].mxu1 %v11147_v63 }
 0x973   :  { %9760 = vmatpush3.msra.mxu1 %v6039_v7  ;;  %9761 = vmatprep.mubr.f32.mxu1 %v11126_v31 }
 0x974   :  { %9764 = vmatprep.subr.mxu1 %v5951_v4 }
 0x97a   :  { %9762 = vmatmul.mubr.f32.vlgmr.msra.gmra.mrb[22].mxu1 %v11141_v47 }
 0x97b   :  { %9765 = vmatpush3.msra.mxu1 %v5951_v4  ;;  %9766 = vmatprep.mubr.f32.mxu1 %v11126_v31 }
 0x97c   :  { %10111 = vmatprep.subr.bf16.mxu1 %v10419_v49 }
 0x982   :  { %9767 = vmatmul.mubr.f32.vlgmr.msra.gmra.mrb[22].mxu1 %v11141_v47 }
 0x983   :  { %9815 = vmatprep.mubr.msk.f32.mxu1 %vm10415_vm0, %v10414_v0 }
 0x9d3   :  { %v5442_v35 = vpop.permute.xlu0 %5441 }
 0x9d4   :  { %v5444_v37 = vmul.f32 %v10389_v58, %v5442_v35 }
 0x9d6   :  { %5448 = vrot.lane.b32.xlu1 %v5444_v37, %s10416_s0 }
 0xa48   :  { %v5449_v9 = vpop.permute.xlu1 %5448 }
 0xa49   :  { %v5458_v11 = vand.u32 4294901760, %v5449_v9 }
 0xa4b   :  { %v5545_v13 = vsub.f32 %v5449_v9, %v5458_v11  ;;  %9709 = vmatprep.subr.mxu0 %v5458_v11 }
 0xa4c   :  { %9710 = vmatpush3.msra.mxu0 %v5458_v11 }
 0xa4d   :  { %9712 = vmatmul.mubr.f32.vlgmr.msra.gmra.mrb[30].mxu0 %v5537_v22  ;;  %v5546_v51 = vand.u32 4294901760, %v5545_v13 }
 0xa4e   :  { %9716 = vmatprep.mubr.f32.mxu0 %v11126_v31 }
 0xa4f   :  { %v5547_v12 = vsub.f32 %v5545_v13, %v5546_v51 }
 0xa51   :  { %v5548_v10 = vand.u32 4294901760, %v5547_v12 }
 0xa53   :  { %9714 = vmatprep.subr.mxu0 %v5548_v10 }
 0xa54   :  { %9715 = vmatpush3.msra.mxu0 %v5548_v10 }
 0xa55   :  { %9717 = vmatmul.mubr.f32.vlgmr.msra.gmra.mrb[30].mxu0 %v11141_v47  ;;  %9719 = vmatprep.subr.mxu0 %v5545_v13  ;;  %v9768_v5 = vpop.f32.mrb[22].mxu1 }
 0xa56   :  { %v6440_v18 = vadd.f32 %v9768_v5, %v5949_v15  ;;  %9720 = vmatpush3.msra.mxu0 %v5545_v13  ;;  %v6429_v20 = vpop.f32.mrb[23].mxu1  ;;  %9721 = vmatprep.mubr.f32.mxu0 %v11129_v38 }
 0xa57   :  { %v6439_v21 = vadd.f32 %v6429_v20, %v5948_v6  ;;  %9724 = vmatprep.subr.mxu0 %v5458_v11  ;;  %v11256_v6 = vand.u32 4294901760, %v7836_v17 }
 0xa58   :  { %v7380_v24 = vand.u32 4294901760, %v6440_v18 }
 0xa59   :  { %v7377_v28 = vand.u32 4294901760, %v6439_v21  ;;  %v7906_v20 = vsub.f32 %v7836_v17, %v11256_v6  ;;  %v6444_v17 = vld [vmem:[%s11403_s9 + $0x20] sm:$0xff] }
 0xa5a   :  { %v11177_v26 = vsub.f32 %v6440_v18, %v7380_v24 }
 0xa5b   :  { %v11179_v16 = vpack.c.bf16 %v7380_v24, %v7377_v28  ;;  %v11181_v25 = vsub.f32 %v6439_v21, %v7377_v28  ;;  %v7907_v24 = vand.u32 4294901760, %v7906_v20 }
 0xa5c   :  { %v7463_v29 = vand.u32 4294901760, %v11177_v26 }
 0xa5d   :  { %v7456_v19 = vand.u32 4294901760, %v11181_v25  ;;  %v10136_v27 = vpack.c.bf16 %v11177_v26, %v11181_v25  ;;  %9722 = vmatmul.mubr.f32.vlgmr.msra.gmra.mrb[30].mxu0 %v11144_v59  ;;  %v6982_v59 = vand.u32 4294901760, %v6981_v54 }
 0xa5e   :  { %v7464_v23 = vsub.f32 %v11177_v26, %v7463_v29  ;;  %9725 = vmatpush3.msra.mxu0 %v5458_v11  ;;  %9726 = vmatprep.mubr.f32.mxu0 %v11132_v39  ;;  %v6441_v39 = vld [vmem:[%s11399_s6 + $0x10] sm:$0xff] }
 0xa5f   :  { %v7457_v30 = vsub.f32 %v11181_v25, %v7456_v19  ;;  %9729 = vmatprep.subr.mxu0 %v5546_v51  ;;  %v11191_v38 = vpack.c.bf16 %v7463_v29, %v7456_v19  ;;  %v6449_v45 = vsel %vm82_vm1, %v6441_v39, 0  ;;  %v6983_v4 = vsub.f32 %v6981_v54, %v6982_v59  ;;  %v10410_v26 = vld [vmem:[%s11400_s4 + $0x30] ss:$8 sps:$4 sm:$0xff]  }
 0xa60   :  { %v7465_v40 = vand.u32 4294901760, %v7464_v23  ;;  %v7372_v10 = vadd.f32 %v6442_v44, %v6441_v39  ;;  %v7908_v29 = vsub.f32 %v7906_v20, %v7907_v24 }
 0xa61   :  { %v7458_v41 = vand.u32 4294901760, %v7457_v30  ;;  %v6984_v34 = vand.u32 4294901760, %v6983_v4 }
 0xa62   :  { %v7374_v15 = vsel %vm82_vm1, %v7372_v10, 0  ;;  %v7909_v23 = vand.u32 4294901760, %v7908_v29 }
 0xa63   :  { %v11193_v43 = vpack.c.bf16 %v7465_v40, %v7458_v41  ;;  %v11254_v5 = vand.u32 4294901760, %v7374_v15 }
 0xa65   :  { %9727 = vmatmul.mubr.f32.vlgmr.msra.gmra.mrb[30].mxu0 %v11147_v63  ;;  %v7444_v18 = vsub.f32 %v7374_v15, %v11254_v5 }
 0xa66   :  { %9730 = vmatpush3.msra.mxu0 %v5546_v51  ;;  %9731 = vmatprep.mubr.f32.mxu0 %v11126_v31 }
 0xa67   :  { %9734 = vmatprep.subr.mxu0 %v5458_v11  ;;  %v7445_v21 = vand.u32 4294901760, %v7444_v18 }
 0xa69   :  { %v7446_v28 = vsub.f32 %v7444_v18, %v7445_v21 }
 0xa6b   :  { %v7447_v19 = vand.u32 4294901760, %v7446_v28 }
 0xa6d   :  { %9732 = vmatmul.mubr.f32.vlgmr.msra.gmra.mrb[30].mxu0 %v11141_v47 }
 0xa6e   :  { %9735 = vmatpush3.msra.mxu0 %v5458_v11  ;;  %9736 = vmatprep.mubr.f32.mxu0 %v11126_v31  ;;  %v11211_v31 = vand.u32 4294901760, %v6449_v45 }
 0xa6f   :  { %10093 = vmatprep.subr.bf16.mxu0 %v10419_v49 }
 0xa70   :  { %v6519_v53 = vsub.f32 %v6449_v45, %v11211_v31 }
 0xa75   :  { %9737 = vmatmul.mubr.f32.vlgmr.msra.gmra.mrb[30].mxu0 %v11141_v47  ;;  %v6520_v47 = vand.u32 4294901760, %v6519_v53 }
 0xa76   :  { %9773 = vmatprep.mubr.msk.f32.mxu0 %vm10415_vm0, %v10414_v0 }
 0xa77   :  { %v6521_v42 = vsub.f32 %v6519_v53, %v6520_v47 }
 0xa79   :  { %v6522_v33 = vand.u32 4294901760, %v6521_v42 }
 0xb48   :  { %v9738_v63 = vpop.f32.mrb[30].mxu0 }
 0xb49   :  { %v11219_v58 = vadd.f32 %v9738_v63, %v5446_v56  ;;  %v5936_v3 = vpop.f32.mrb[31].mxu0 }
 0xb4a   :  { %v11221_v50 = vadd.f32 %v5936_v3, %v5445_v1 }
 0xb4b   :  { %v6455_v32 = vand.u32 4294901760, %v11219_v58 }
 0xb4c   :  { %v6452_v22 = vand.u32 4294901760, %v11221_v50 }
 0xb4d   :  { %v6537_v57 = vsub.f32 %v11219_v58, %v6455_v32 }
 0xb4e   :  { %v10094_v7 = vpack.c.bf16 %v6455_v32, %v6452_v22  ;;  %v6530_v48 = vsub.f32 %v11221_v50, %v6452_v22  ;;  %v10413_v32 = vld [vmem:[%s11402_s5 + $0x8] sm:$0xff] }
 0xb4f   :  { %v6538_v8 = vand.u32 4294901760, %v6537_v57 }
 0xb50   :  { %v6531_v61 = vand.u32 4294901760, %v6530_v48  ;;  %10095 = vmatpush3.bf16.msra.mxu0 %v10094_v7  ;;  %10113 = vmatpush3.bf16.msra.mxu1 %v10094_v7  ;;  %v10100_v35 = vpack.c.bf16 %v6537_v57, %v6530_v48 }
 0xb51   :  { %v6539_v37 = vsub.f32 %v6537_v57, %v6538_v8  ;;  %10096 = vmatprep.subr.bf16.mxu0 %v10419_v49  ;;  %10114 = vmatprep.subr.bf16.mxu1 %v10419_v49 }
 0xb52   :  { %v6532_v9 = vsub.f32 %v6530_v48, %v6531_v61  ;;  %v10106_v11 = vpack.c.bf16 %v6538_v8, %v6531_v61 }
 0xb53   :  { %9774 = vmatmul.mubr.f32.vlgmr.msra.gmra.mrb[32].mxu0 %v6522_v33  ;;  %9816 = vmatmul.mubr.f32.vlgmr.msra.gmra.mrb[32].mxu1 %v6984_v34  ;;  %v6540_v13 = vand.u32 4294901760, %v6539_v37 }
 0xb54   :  { %v6533_v51 = vand.u32 4294901760, %v6532_v9  ;;  %9780 = vmatprep.mubr.msk.f32.mxu0 %vm10415_vm0, %v10414_v0  ;;  %9822 = vmatprep.mubr.msk.f32.mxu1 %vm10415_vm0, %v10414_v0 }
 0xb56   :  { %v10097_v12 = vpack.c.bf16 %v6540_v13, %v6533_v51 }
 0xb58   :  { %10098 = vmatpush3.bf16.msra.mxu0 %v10097_v12  ;;  %10116 = vmatpush3.bf16.msra.mxu1 %v10097_v12 }
 0xb59   :  { %10099 = vmatprep.subr.bf16.mxu0 %v10419_v49  ;;  %10117 = vmatprep.subr.bf16.mxu1 %v10419_v49 }
 0xb5b   :  { %9781 = vmatmul.mubr.f32.vlgmr.msra.gmra.mrb[32].mxu0 %v11211_v31  ;;  %9823 = vmatmul.mubr.f32.vlgmr.msra.gmra.mrb[32].mxu1 %v11213_v52 }
 0xb5c   :  { %10101 = vmatpush3.bf16.msra.mxu0 %v10100_v35  ;;  %10119 = vmatpush3.bf16.msra.mxu1 %v10100_v35 }
 0xb5d   :  { %9787 = vmatprep.mubr.msk.f32.mxu0 %vm10415_vm0, %v10414_v0  ;;  %10102 = vmatprep.subr.bf16.mxu0 %v10419_v49 }
 0xb5e   :  { %9829 = vmatprep.mubr.msk.f32.mxu1 %vm10415_vm0, %v10414_v0  ;;  %10120 = vmatprep.subr.bf16.mxu1 %v10419_v49 }
 0xb63   :  { %9788 = vmatmul.mubr.f32.vlgmr.msra.gmra.mrb[32].mxu0 %v6519_v53  ;;  %9830 = vmatmul.mubr.f32.vlgmr.msra.gmra.mrb[32].mxu1 %v6981_v54 }
 0xb64   :  { %10104 = vmatpush3.bf16.msra.mxu0 %v10094_v7  ;;  %10122 = vmatpush3.bf16.msra.mxu1 %v10094_v7 }
 0xb65   :  { %9794 = vmatprep.mubr.msk.f32.mxu0 %vm10415_vm0, %v10414_v0  ;;  %10105 = vmatprep.subr.bf16.mxu0 %v10419_v49 }
 0xb66   :  { %9836 = vmatprep.mubr.msk.f32.mxu1 %vm10415_vm0, %v10414_v0  ;;  %10123 = vmatprep.subr.bf16.mxu1 %v10419_v49 }
 0xb6b   :  { %9795 = vmatmul.mubr.f32.vlgmr.msra.gmra.mrb[32].mxu0 %v6520_v47  ;;  %9837 = vmatmul.mubr.f32.vlgmr.msra.gmra.mrb[32].mxu1 %v6982_v59  ;;  %v10412_v59 = vld [vmem:[%s11402_s5] sm:$0xff] }
 0xb6c   :  { %10107 = vmatpush3.bf16.msra.mxu0 %v10106_v11  ;;  %10125 = vmatpush3.bf16.msra.mxu1 %v10106_v11 }
 0xb6d   :  { %9801 = vmatprep.mubr.msk.f32.mxu0 %vm10415_vm0, %v10414_v0  ;;  %10108 = vmatprep.subr.bf16.mxu0 %v10419_v49 }
 0xb6e   :  { %9843 = vmatprep.mubr.msk.f32.mxu1 %vm10415_vm0, %v10414_v0  ;;  %10126 = vmatprep.subr.bf16.mxu1 %v10419_v49 }
 0xb73   :  { %9802 = vmatmul.mubr.f32.vlgmr.msra.gmra.mrb[32].mxu0 %v11211_v31  ;;  %9844 = vmatmul.mubr.f32.vlgmr.msra.gmra.mrb[32].mxu1 %v11213_v52 }
 0xb74   :  { %10110 = vmatpush3.bf16.msra.mxu0 %v10094_v7  ;;  %10128 = vmatpush3.bf16.msra.mxu1 %v10094_v7 }
 0xb75   :  { %9808 = vmatprep.mubr.msk.f32.mxu0 %vm10415_vm0, %v10414_v0  ;;  %9850 = vmatprep.mubr.msk.f32.mxu1 %vm10415_vm0, %v10414_v0 }
 0xb76   :  { %10129 = vmatprep.subr.bf16.mxu0 %v10419_v49  ;;  %10147 = vmatprep.subr.bf16.mxu1 %v10419_v49 }
 0xb7b   :  { %9809 = vmatmul.mubr.f32.vlgmr.msra.gmra.mrb[32].mxu0 %v11211_v31  ;;  %9851 = vmatmul.mubr.f32.vlgmr.msra.gmra.mrb[32].mxu1 %v11213_v52 }
 0xb7c   :  { %10131 = vmatpush3.bf16.msra.mxu0 %v11179_v16  ;;  %10149 = vmatpush3.bf16.msra.mxu1 %v10820_v55 }
 0xb7d   :  { %9857 = vmatprep.mubr.msk.f32.mxu0 %vm10415_vm0, %v10414_v0  ;;  %10132 = vmatprep.subr.bf16.mxu0 %v10419_v49 }
 0xb7e   :  { %9899 = vmatprep.mubr.msk.f32.mxu1 %vm10415_vm0, %v10414_v0  ;;  %10150 = vmatprep.subr.bf16.mxu1 %v10419_v49 }
 0xb7f   :  { %9858 = vmatmul.mubr.f32.vlgmr.msra.gmra.mrb[34].mxu0 %v7447_v19  ;;  %9900 = vmatmul.mubr.f32.vlgmr.msra.gmra.mrb[34].mxu1 %v7909_v23  ;;  %v6445_v19 = vld [vmem:[%s11403_s9 + $0x28] sm:$0xff] }
 0xb80   :  { %10134 = vmatpush3.bf16.msra.mxu0 %v11193_v43  ;;  %10152 = vmatpush3.bf16.msra.mxu1 %v10830_v2  ;;  %v10409_v2 = vld [vmem:[%s11400_s4 + $0x14] ss:$8 sps:$4 sm:$0xff]   ;;  %v8439_v23 = vsel %vm2466_vm3, %v6445_v19, 0 }
 0xb81   :  { %9864 = vmatprep.mubr.msk.f32.mxu0 %vm10415_vm0, %v10414_v0  ;;  %10135 = vmatprep.subr.bf16.mxu0 %v10419_v49 }
 0xb82   :  { %9906 = vmatprep.mubr.msk.f32.mxu1 %vm10415_vm0, %v10414_v0  ;;  %10153 = vmatprep.subr.bf16.mxu1 %v10419_v49 }
 0xb87   :  { %9865 = vmatmul.mubr.f32.vlgmr.msra.gmra.mrb[34].mxu0 %v11254_v5  ;;  %9907 = vmatmul.mubr.f32.vlgmr.msra.gmra.mrb[34].mxu1 %v11256_v6 }
 0xb88   :  { %10137 = vmatpush3.bf16.msra.mxu0 %v10136_v27  ;;  %10155 = vmatpush3.bf16.msra.mxu1 %v10822_v60  ;;  %v10404_v60 = vld [vmem:[%s11400_s4 + $0x24] ss:$8 sps:$4 sm:$0xff]  }
 0xb89   :  { %9871 = vmatprep.mubr.msk.f32.mxu0 %vm10415_vm0, %v10414_v0  ;;  %10138 = vmatprep.subr.bf16.mxu0 %v10419_v49 }
 0xb8a   :  { %9913 = vmatprep.mubr.msk.f32.mxu1 %vm10415_vm0, %v10414_v0  ;;  %10156 = vmatprep.subr.bf16.mxu1 %v10419_v49 }
 0xb8f   :  { %9872 = vmatmul.mubr.f32.vlgmr.msra.gmra.mrb[34].mxu0 %v7444_v18  ;;  %9914 = vmatmul.mubr.f32.vlgmr.msra.gmra.mrb[34].mxu1 %v7906_v20 }
 0xb90   :  { %10140 = vmatpush3.bf16.msra.mxu0 %v11179_v16  ;;  %10158 = vmatpush3.bf16.msra.mxu1 %v10820_v55 }
 0xb91   :  { %9878 = vmatprep.mubr.msk.f32.mxu0 %vm10415_vm0, %v10414_v0  ;;  %10141 = vmatprep.subr.bf16.mxu0 %v10419_v49 }
 0xb92   :  { %9920 = vmatprep.mubr.msk.f32.mxu1 %vm10415_vm0, %v10414_v0  ;;  %10159 = vmatprep.subr.bf16.mxu1 %v10419_v49 }
 0xb97   :  { %9879 = vmatmul.mubr.f32.vlgmr.msra.gmra.mrb[34].mxu0 %v7445_v21  ;;  %9921 = vmatmul.mubr.f32.vlgmr.msra.gmra.mrb[34].mxu1 %v7907_v24 }
 0xb98   :  { %10143 = vmatpush3.bf16.msra.mxu0 %v11191_v38  ;;  %10161 = vmatpush3.bf16.msra.mxu1 %v10826_v62  ;;  %v10408_v62 = vld [vmem:[%s11400_s4 + $0x34] ss:$8 sps:$4 sm:$0xff]  }
 0xb99   :  { %9885 = vmatprep.mubr.msk.f32.mxu0 %vm10415_vm0, %v10414_v0  ;;  %10144 = vmatprep.subr.bf16.mxu0 %v10419_v49 }
 0xb9a   :  { %9927 = vmatprep.mubr.msk.f32.mxu1 %vm10415_vm0, %v10414_v0  ;;  %10162 = vmatprep.subr.bf16.mxu1 %v10419_v49  ;;  %v10405_v49 = vld [vmem:[%s11400_s4 + $0x4] ss:$8 sps:$4 sm:$0xff]  }
 0xb9f   :  { %9886 = vmatmul.mubr.f32.vlgmr.msra.gmra.mrb[34].mxu0 %v11254_v5  ;;  %9928 = vmatmul.mubr.f32.vlgmr.msra.gmra.mrb[34].mxu1 %v11256_v6 }
 0xba0   :  { %10146 = vmatpush3.bf16.msra.mxu0 %v11179_v16  ;;  %10164 = vmatpush3.bf16.msra.mxu1 %v10820_v55  ;;  %v10406_v55 = vld [vmem:[%s11400_s4 + $0x20] ss:$8 sps:$4 sm:$0xff]   ;;  %v10411_v16 = vld [vmem:[%s11400_s4 + $0x10] ss:$8 sps:$4 sm:$0xff]  }
 0xba1   :  { %9892 = vmatprep.mubr.msk.f32.mxu0 %vm10415_vm0, %v10414_v0  ;;  %9934 = vmatprep.mubr.msk.f32.mxu1 %vm10415_vm0, %v10414_v0  ;;  %v10407_v0 = vld [vmem:[%s11400_s4] ss:$8 sps:$4 sm:$0xff]  }
 0xba2   :  { %8302 = vmatprep.subr.bf16.mxu0 %v10404_v60  ;;  %8346 = vmatprep.subr.bf16.mxu1 %v10405_v49  ;;  %v8517_v60 = vand.u32 4294901760, %v8439_v23 }
 0xba4   :  { %v8518_v49 = vsub.f32 %v8439_v23, %v8517_v60 }
 0xba7   :  { %9893 = vmatmul.mubr.f32.vlgmr.msra.gmra.mrb[34].mxu0 %v11254_v5  ;;  %9935 = vmatmul.mubr.f32.vlgmr.msra.gmra.mrb[34].mxu1 %v11256_v6  ;;  %v8436_v5 = vsel %vm2466_vm3, %v6444_v17, 0 }
 0xba8   :  { %8303 = vmatpush1.bf16.msra.mxu0 %v10406_v55  ;;  %8347 = vmatpush1.bf16.msra.mxu1 %v10407_v0  ;;  %v8507_v6 = vand.u32 4294901760, %v8436_v5  ;;  %v8519_v55 = vand.u32 4294901760, %v8518_v49 }
 0xba9   :  { %8304 = vmatprep.subr.bf16.mxu0 %v10408_v62  ;;  %8348 = vmatprep.subr.bf16.mxu1 %v10409_v2 }
 0xbaa   :  { %8334 = vmatprep.mubr.bf16.mxu0 %v10420_v36  ;;  %8378 = vmatprep.mubr.bf16.mxu1 %v10420_v36  ;;  %v8508_v18 = vsub.f32 %v8436_v5, %v8507_v6  ;;  %v8520_v0 = vsub.f32 %v8518_v49, %v8519_v55 }
 0xbac   :  { %8305 = vmatpush1.bf16.msra.mxu0 %v10410_v26  ;;  %8349 = vmatpush1.bf16.msra.mxu1 %v10411_v16  ;;  %v8509_v20 = vand.u32 4294901760, %v8508_v18  ;;  %v8521_v26 = vand.u32 4294901760, %v8520_v0 }
 0xbae   :  { %v8510_v21 = vsub.f32 %v8508_v18, %v8509_v20 }
 0xbb0   :  { %v8511_v24 = vand.u32 4294901760, %v8510_v21 }
 0xc4e   :  { %v6906_v25 = vpop.f32.mrb[32].mxu0  ;;  %v7368_v27 = vpop.f32.mrb[32].mxu1 }
 0xc4f   :  { %v8297_v30 = vpack.c.bf16 %v6906_v25, %v6906_v25  ;;  %v8298_v38 = vpack.c.bf16 %v7368_v27, %v7368_v27  ;;  %v9810_v40 = vpop.f32.mrb[33].mxu0  ;;  %v9852_v41 = vpop.f32.mrb[33].mxu1 }
 0xc50   :  { %v6446_v40 = vld [vmem:[%s11404_s10 + $0x20] sm:$0xff] }
 0xc51   :  { %8971 = vmatmul.mubr.msk.bf16.vlgmr.msra.gmra.mrb[36].mxu0 %vm343_vm2, %v8298_v38  ;;  %8972 = vmatmul.mubr.msk.bf16.vlgmr.msra.gmra.mrb[36].mxu1 %vm343_vm2, %v8297_v30  ;;  %v6447_v38 = vld [vmem:[%s11404_s10 + $0x28] sm:$0xff] }
 0xc52   :  { %9939 = vmatprep.mubr.f32.mxu0 %v8511_v24  ;;  %v8430_v41 = vmul.f32 %v6447_v38, %v11219_v58 }
 0xc7a   :  { %v7831_v36 = vpop.f32.mrb[34].mxu0  ;;  %v8293_v43 = vpop.f32.mrb[34].mxu1 }
 0xc7b   :  { %v9894_v39 = vpop.f32.mrb[35].mxu0  ;;  %v9936_v44 = vpop.f32.mrb[35].mxu1  ;;  %8402 = vrot.lane.b32.xlu1 %v7831_v36, %s10416_s0 }
 0xced   :  { %v8403_v61 = vpop.permute.xlu1 %8402 }
 0xd24   :  { %v8336_v45 = vpop.f32.mrb[36].mxu0  ;;  %v8380_v46 = vpop.f32.mrb[36].mxu1 }
 0xd25   :  { %v8381_v31 = vadd.f32 %v8380_v46, %v8336_v45  ;;  %v8338_v52 = vpop.f32.mrb[37].mxu0  ;;  %v8382_v53 = vpop.f32.mrb[37].mxu1 }
 0xd26   :  { %v8383_v54 = vadd.f32 %v8382_v53, %v8338_v52  ;;  %v8340_v56 = vpop.f32.mrb[38].mxu0  ;;  %v8384_v47 = vpop.f32.mrb[38].mxu1 }
 0xd27   :  { %v8387_v63 = vadd.f32 %v10412_v59, %v8381_v31  ;;  %v8341_v1 = vpop.f32.mrb[39].mxu0  ;;  %v8385_v3 = vpop.f32.mrb[39].mxu1 }
 0xd28   :  { %v8388_v42 = vadd.f32 %v10413_v32, %v8383_v54 }
 0xd29   :  { %v8389_v4 = vadd.f32 %v8387_v63, %v8293_v43  ;;  %v8429_v43 = vmul.f32 %v6446_v40, %v11221_v50 }
 0xd2a   :  { %8391 = vrot.lane.b32.xlu0 %v8388_v42, %s10416_s0 }
 0xd2b   :  { %10392 = vtanh.f32 %v8389_v4  ;;  %v8974_v37 = vmul.f32 -1.442695, %v8389_v4 }
 0xd35   :  { %v10393_v22 = vpop.eup %10392 }
 0xd36   :  { %8414 = vrot.lane.b32.xlu0 %v10393_v22, %s10417_s2 }
 0xd9c   :  { %v8392_v57 = vpop.permute.xlu0 %8391 }
 0xd9d   :  { %v8394_v7 = vadd.f32 %v8392_v57, %v8389_v4 }
 0xd9f   :  { %v8973_v48 = vmul.f32 -1.442695, %v8394_v7 }
 0xda1   :  { %10394 = vpow2.f32 %v8973_v48 }
 0xda8   :  { %v8415_v13 = vpop.permute.xlu0 %8414 }
 0xdab   :  { %v10395_v8 = vpop.eup %10394 }
 0xdac   :  { %v8398_v33 = vadd.f32 1.0, %v10395_v8 }
 0xdae   :  { %10396 = vrcp.f32 %v8398_v33 }
 0xdaf   :  { %10398 = vpow2.f32 %v8974_v37 }
 0xdb8   :  { %v10397_v34 = vpop.eup %10396 }
 0xdb9   :  { %v8405_v35 = vmul.f32 %v10397_v34, %v8403_v61  ;;  %v10399_v9 = vpop.eup %10398 }
 0xdba   :  { %v8409_v11 = vadd.f32 1.0, %v10399_v9 }
 0xdbb   :  { %8419 = vrot.lane.b32.xlu1 %v8405_v35, %s10418_s21 }
 0xdbc   :  { %10400 = vrcp.f32 %v8409_v11 }
 0xdc6   :  { %v10401_v51 = vpop.eup %10400 }
 0xdc7   :  { %v8417_v12 = vmul.f32 %v10401_v51, %v8415_v13 }
 0xe2d   :  { %v8420_v10 = vpop.permute.xlu1 %8419 }
 0xe2e   :  { %v8422_v14 = vadd.f32 %v8420_v10, %v8417_v12 }
 0xe30   :  { %10402 = vtanh.f32 %v8422_v14 }
 0xe3a   :  { %v10403_v15 = vpop.eup %10402 }
 0xe3b   :  { %8425 = vrot.lane.b32.xlu0 %v10403_v15, %s10418_s21 }
 0xead   :  { %v8426_v28 = vpop.permute.xlu0 %8425 }
 0xeae   :  { %v8428_v29 = vmul.f32 %v10401_v51, %v8426_v28 }
 0xeb0   :  { %8432 = vrot.lane.b32.xlu1 %v8428_v29, %s10416_s0 }
 0xf22   :  { %v8433_v62 = vpop.permute.xlu1 %8432 }
 0xf23   :  { %v8442_v2 = vand.u32 4294901760, %v8433_v62 }
 0xf25   :  { %v8529_v16 = vsub.f32 %v8433_v62, %v8442_v2  ;;  %9937 = vmatprep.subr.mxu0 %v8442_v2 }
 0xf26   :  { %9938 = vmatpush3.msra.mxu0 %v8442_v2 }
 0xf27   :  { %v8530_v25 = vand.u32 4294901760, %v8529_v16  ;;  %9940 = vmatmul.mubr.f32.vlgmr.msra.gmra.mrb[40].mxu0 %v8521_v26 }
 0xf28   :  { %9944 = vmatprep.mubr.f32.mxu0 %v8507_v6 }
 0xf29   :  { %v8531_v27 = vsub.f32 %v8529_v16, %v8530_v25 }
 0xf2b   :  { %v8532_v30 = vand.u32 4294901760, %v8531_v27 }
 0xf2d   :  { %9942 = vmatprep.subr.mxu0 %v8532_v30 }
 0xf2e   :  { %9943 = vmatpush3.msra.mxu0 %v8532_v30 }
 0xf2f   :  { %9945 = vmatmul.mubr.f32.vlgmr.msra.gmra.mrb[40].mxu0 %v8517_v60  ;;  %9947 = vmatprep.subr.mxu0 %v8529_v16 }
 0xf30   :  { %9948 = vmatpush3.msra.mxu0 %v8529_v16  ;;  %9949 = vmatprep.mubr.f32.mxu0 %v8508_v18 }
 0xf31   :  { %9952 = vmatprep.subr.mxu0 %v8442_v2 }
 0xf37   :  { %9950 = vmatmul.mubr.f32.vlgmr.msra.gmra.mrb[40].mxu0 %v8518_v49 }
 0xf38   :  { %9953 = vmatpush3.msra.mxu0 %v8442_v2  ;;  %9954 = vmatprep.mubr.f32.mxu0 %v8509_v20 }
 0xf39   :  { %9957 = vmatprep.subr.mxu0 %v8530_v25 }
 0xf3f   :  { %9955 = vmatmul.mubr.f32.vlgmr.msra.gmra.mrb[40].mxu0 %v8519_v55 }
 0xf40   :  { %9958 = vmatpush3.msra.mxu0 %v8530_v25  ;;  %9959 = vmatprep.mubr.f32.mxu0 %v8507_v6 }
 0xf41   :  { %9962 = vmatprep.subr.mxu0 %v8442_v2 }
 0xf47   :  { %9960 = vmatmul.mubr.f32.vlgmr.msra.gmra.mrb[40].mxu0 %v8517_v60 }
 0xf48   :  { %9963 = vmatpush3.msra.mxu0 %v8442_v2  ;;  %9964 = vmatprep.mubr.f32.mxu0 %v8507_v6 }
 0xf4f   :  { %9965 = vmatmul.mubr.f32.vlgmr.msra.gmra.mrb[40].mxu0 %v8517_v60 }
0x1022   :  { %v9966_v36 = vpop.f32.mrb[40].mxu0 }
0x1023   :  { %v8931_v39 = vadd.f32 %v9966_v36, %v8430_v41  ;;  %v8920_v44 = vpop.f32.mrb[41].mxu0 }
0x1024   :  { %v8930_v45 = vadd.f32 %v8920_v44, %v8429_v43 }
0x1025   :  { %8933 = vst.msk [vmem:[%s11405_s11 + $0x8] sm:$0xff] %vm343_vm2, %v8931_v39 }
0x1026   :  { %8932 = vst.msk [vmem:[%s11405_s11] sm:$0xff] %vm343_vm2, %v8930_v45 }

</bundles_post_ra>
